<compile_context>
chip_gen: v5e
topology: v5e:2x2
jax: 0.10.0
libtpu: 0.0.40
codegen_flags: <defaults>
</compile_context>

<pallas_src>
import functools

import jax
import jax.numpy as jnp
from jax.experimental import pallas as pl
from jax.experimental.pallas import tpu as pltpu

MATMUL_DTYPE = jnp.bfloat16
# Explicit scoped-VMEM budget: leaves headroom inside v7x's 64 MiB physical VMEM
# while allowing larger-than-default double-buffered tiles on v5e/v6e.
VMEM_LIMIT_BYTES = 48 * 1024 * 1024


def _round_up(x, m):
    return (x + m - 1) // m * m


def rgcn_layer_kernel(adj_ref, hsrc_ref, hdst_ref, v_ref, wloop_ref, bias_ref,
                      out_ref, acc_ref, *, num_bases, apply_relu):
    """One RelGraphConv layer. grid = (dst_tiles, src_tiles).

    adj_ref  : (B, TM, TK) bf16  folded adjacency tile, A'_b = sum_r w_comp[r,b]*A_r
    hsrc_ref : (TK, Dp)    bf16  input features of the src (contraction) tile
    hdst_ref : (TM, Dp)    bf16  input features of the dst tile (self-loop)
    v_ref    : (B, Dp, Dp) bf16  relation bases         (resident across grid)
    wloop_ref: (Dp, Dp)    bf16  self-loop weight       (resident)
    bias_ref : (1, Dp)     f32   bias                   (resident)
    out_ref  : (TM, Dp)    f32 (last layer) / bf16 (intermediate layers)
    acc_ref  : (B, TM, Dp) f32   per-basis partial sums over src tiles (scratch)
    """
    k = pl.program_id(1)

    @pl.when(k == 0)
    def _():
        acc_ref[...] = jnp.zeros_like(acc_ref)

    # acc_b += A'_b[dst_tile, src_tile] @ H[src_tile]
    # (B MXU matmuls per grid step; w_comp already folded into the adjacency,
    #  so there is no per-relation matmul/VPU-combine/cast work at all.)
    hsrc = hsrc_ref[...]
    for b in range(num_bases):
        acc_ref[b] += jnp.dot(adj_ref[b], hsrc,
                              preferred_element_type=jnp.float32)

    @pl.when(k == pl.num_programs(1) - 1)
    def _():
        # out = sum_b (A'_b @ H) @ V_b + H_dst @ W_loop + bias
        res = jnp.dot(hdst_ref[...], wloop_ref[...],
                      preferred_element_type=jnp.float32) + bias_ref[...]
        for b in range(num_bases):
            res = res + jnp.dot(acc_ref[b].astype(MATMUL_DTYPE), v_ref[b],
                                preferred_element_type=jnp.float32)
        if apply_relu:
            res = jnp.maximum(res, 0.0)
        out_ref[...] = res.astype(out_ref.dtype)


def rgcn_layer_pallas(h, adj_folded, V, w_loop, bias, *, apply_relu, out_dtype):
    """One padded RelGraphConv layer. h: [Np, Dp] bf16, adj_folded: [B, Np, Np] bf16."""
    Np, Dp = h.shape
    B = V.shape[0]
    # >=256 tiles fill the 256-wide v6e/v7x MXU; fall back to 128 otherwise (v5e
    # 128x128 MXU is full either way).
    tile = 256 if Np % 256 == 0 else 128
    grid = (Np // tile, Np // tile)

    flops = 2 * B * Np * Np * Dp + 2 * (B + 1) * Np * Dp * Dp
    bytes_accessed = (adj_folded.size + V.size + w_loop.size) * 2 \
        + (Np // tile) * Np * Dp * 2 + Np * Dp * 2 + bias.size * 4 \
        + Np * Dp * jnp.dtype(out_dtype).itemsize

    kernel = functools.partial(rgcn_layer_kernel, num_bases=B,
                               apply_relu=apply_relu)
    return pl.pallas_call(
        kernel,
        out_shape=jax.ShapeDtypeStruct((Np, Dp), out_dtype),
        grid=grid,
        in_specs=[
            # The O(N^2) folded adjacency is the only streamed big operand:
            # double-buffered (B, tile, tile) tiles behind the MXU.
            pl.BlockSpec((B, tile, tile), lambda i, k: (0, i, k)),
            # H as src (contraction) tile and as dst tile (self-loop).
            pl.BlockSpec((tile, Dp), lambda i, k: (k, 0)),
            pl.BlockSpec((tile, Dp), lambda i, k: (i, 0)),
            # Weights stay resident across grid steps (constant index maps).
            pl.BlockSpec((B, Dp, Dp), lambda i, k: (0, 0, 0)),
            pl.BlockSpec((Dp, Dp), lambda i, k: (0, 0)),
            pl.BlockSpec((1, Dp), lambda i, k: (0, 0)),
        ],
        out_specs=pl.BlockSpec((tile, Dp), lambda i, k: (i, 0)),
        scratch_shapes=[pltpu.VMEM((B, tile, Dp), jnp.float32)],
        compiler_params=pltpu.CompilerParams(
            dimension_semantics=("parallel", "arbitrary"),
            vmem_limit_bytes=VMEM_LIMIT_BYTES),
        cost_estimate=pl.CostEstimate(flops=flops, transcendentals=0,
                                      bytes_accessed=bytes_accessed),
    )(adj_folded, h, h, V, w_loop, bias)


@jax.jit
def rgcn_forward_pallas(h, adj, layers):
    """Multi-layer RGCN forward. h: [N, D] f32, adj: [R, N, N] f32 (norms folded in)."""
    N, D = h.shape
    L = len(layers)
    Np = _round_up(N, 128)   # lane-dense contraction dim, also a bf16 16-multiple
    Dp = _round_up(D, 128)   # lane-dense hidden dim

    # Fold basis coefficients into the adjacency (tiny wrapper-side einsum):
    #   A'[l, b] = sum_r w_comp[l, r, b] * A_r
    w_comp = jnp.stack([lp["w_comp"] for lp in layers])       # [L, R, B]
    adj_folded = jnp.einsum("lrb,rmn->lbmn", w_comp, adj)     # [L, B, N, N]

    # Zero-pad to TPU-friendly shapes with jnp.pad (no .at[].set chains).
    # Zero padding preserves semantics: padded adjacency columns are zero, so
    # padded node rows never feed real outputs (see invariant note at the top).
    pad_n, pad_d = Np - N, Dp - D
    h_p = jnp.pad(h, ((0, pad_n), (0, pad_d))).astype(MATMUL_DTYPE)
    adj_p = jnp.pad(adj_folded,
                    ((0, 0), (0, 0), (0, pad_n), (0, pad_n))).astype(MATMUL_DTYPE)
    V_p = jnp.pad(jnp.stack([lp["V"] for lp in layers]),
                  ((0, 0), (0, 0), (0, pad_d), (0, pad_d))).astype(MATMUL_DTYPE)
    wl_p = jnp.pad(jnp.stack([lp["w_loop"] for lp in layers]),
                   ((0, 0), (0, pad_d), (0, pad_d))).astype(MATMUL_DTYPE)
    bias_p = jnp.pad(jnp.stack([lp["bias"] for lp in layers]),
                     ((0, 0), (0, 0), (0, pad_d)))             # f32

    x = h_p
    for layer in range(L):
        last = layer == L - 1
        x = rgcn_layer_pallas(
            x, adj_p[layer], V_p[layer], wl_p[layer], bias_p[layer],
            apply_relu=not last,
            out_dtype=jnp.float32 if last else MATMUL_DTYPE)
        # TODO(synk): dropout is identity for the default dropout=0; not implemented.
    return x[:N, :D]


def rgcn_forward_ref(h, adj, layers):
    """Pure-JAX f32 reference with the exact module semantics."""
    for idx, lp in enumerate(layers):
        w_rel = jnp.einsum("rb,bij->rij", lp["w_comp"], lp["V"])
        msg = jnp.einsum("nd,rdo->rno", h, w_rel)
        agg = jnp.einsum("rmn,rno->mo", adj, msg)
        h_new = agg + h @ lp["w_loop"] + lp["bias"]
        if idx < len(layers) - 1:
            h_new = jnp.maximum(h_new, 0.0)
        h = h_new
    return h


def link_predict_forward(params, adj, node_ids, *, use_ref=False):
    """LinkPredict.forward(g, h, r, norm) -> node embeddings [N, h_dim]."""
    # EmbeddingLayer: embedding(h.squeeze()) -- gather is glue, not the hot path.
    h = jnp.take(params["embedding"], node_ids, axis=0)
    fn = rgcn_forward_ref if use_ref else rgcn_forward_pallas
    return fn(h, adj, params["layers"])


def init_params(key, num_nodes, h_dim, num_rels, num_bases, num_hidden_layers):
    keys = jax.random.split(key, 2 + 4 * num_hidden_layers)
    params = {
        "embedding": 0.1 * jax.random.normal(keys[0], (num_nodes, h_dim), jnp.float32),
        # w_relation is part of LinkPredict but unused by forward(); kept for parity.
        "w_relation": 0.1 * jax.random.normal(keys[1], (num_rels, h_dim), jnp.float32),
        "layers": [],
    }
    for i in range(num_hidden_layers):
        k = keys[2 + 4 * i: 2 + 4 * (i + 1)]
        params["layers"].append({
            "V": 0.1 * jax.random.normal(k[0], (num_bases, h_dim, h_dim), jnp.float32),
            "w_comp": jax.random.normal(k[1], (num_rels, num_bases), jnp.float32),
            "w_loop": 0.1 * jax.random.normal(k[2], (h_dim, h_dim), jnp.float32),
            "bias": jnp.zeros((1, h_dim), jnp.float32),
        })
    return params


if __name__ == "__main__":
    num_nodes = 32          # in_dim: number of node entities
    h_dim = 32
    num_rels = 4
    num_bases = 2
    num_hidden_layers = 2
    num_edges = 64

    key = jax.random.PRNGKey(0)
    k_graph, k_params = jax.random.split(key)
    kg = jax.random.split(k_graph, 4)

    # Synthetic graph g + (h, r, norm) inputs of forward():
    node_ids = jnp.arange(num_nodes, dtype=jnp.int32)                        # h
    src = jax.random.randint(kg[0], (num_edges,), 0, num_nodes)
    dst = jax.random.randint(kg[1], (num_edges,), 0, num_nodes)
    etype = jax.random.randint(kg[2], (num_edges,), 0, num_rels)             # r
    norm = jax.random.uniform(kg[3], (num_edges,), jnp.float32, 0.1, 1.0)    # norm

    # Dense per-relation adjacency with the edge norm folded in (graph glue).
    adj = jnp.zeros((num_rels, num_nodes, num_nodes), jnp.float32)
    adj = adj.at[etype, dst, src].add(norm)

    params = init_params(k_params, num_nodes, h_dim, num_rels, num_bases,
                         num_hidden_layers)

    out = link_predict_forward(params, adj, node_ids)
    out = jax.block_until_ready(out)

    ref = link_predict_forward(params, adj, node_ids, use_ref=True)
    assert out.shape == (num_nodes, h_dim) and out.dtype == jnp.float32
    # bf16 MXU operands (f32 accumulation) -> compare at bf16-appropriate tolerance.
    assert jnp.allclose(out, ref, rtol=2e-2, atol=2e-2), "mismatch vs JAX reference"

    print("KERNEL_OK")
</pallas_src>

<mosaic_0001>
module attributes {stable_mosaic.version = 11 : i64} {
  func.func @rgcn_layer_kernel(%arg0: i32, %arg1: i32, %arg2: memref<2x128x128xbf16, #tpu.memory_space<vmem>>, %arg3: memref<128x128xbf16, #tpu.memory_space<vmem>>, %arg4: memref<128x128xbf16, #tpu.memory_space<vmem>>, %arg5: memref<2x128x128xbf16, #tpu.memory_space<vmem>>, %arg6: memref<128x128xbf16, #tpu.memory_space<vmem>>, %arg7: memref<1x128xf32, #tpu.memory_space<vmem>>, %arg8: memref<128x128xbf16, #tpu.memory_space<vmem>>, %arg9: memref<2x128x128xf32, #tpu.memory_space<vmem>>) attributes {dimension_semantics = [#tpu.dimension_semantics<parallel>, #tpu.dimension_semantics<arbitrary>], iteration_bounds = array<i64: 1, 1>, scalar_prefetch = 0 : i64, scratch_operands = 1 : i64, tpu.core_type = #tpu.core_type<tc>, window_params = [{transform_indices = @transform_0, window_bounds = array<i64: 2, 128, 128>}, {transform_indices = @transform_1, window_bounds = array<i64: 128, 128>}, {transform_indices = @transform_2, window_bounds = array<i64: 128, 128>}, {pipeline_mode = #tpu.pipeline_mode<synchronous>, transform_indices = @transform_3, window_bounds = array<i64: 2, 128, 128>}, {pipeline_mode = #tpu.pipeline_mode<synchronous>, transform_indices = @transform_4, window_bounds = array<i64: 128, 128>}, {pipeline_mode = #tpu.pipeline_mode<synchronous>, transform_indices = @transform_5, window_bounds = array<i64: 1, 128>}, {transform_indices = @transform_6, window_bounds = array<i64: 128, 128>}]} {
    %c0_i32 = arith.constant 0 : i32
    %0 = arith.cmpi eq, %arg1, %c0_i32 : i32
    %1 = arith.extui %0 : i1 to i32
    %c0_i32_0 = arith.constant 0 : i32
    %2 = arith.cmpi ne, %1, %c0_i32_0 : i32
    scf.if %2 {
      %cst_22 = arith.constant 0.000000e+00 : f32
      %25 = vector.broadcast %cst_22 : f32 to vector<2x128x128xf32>
      %c0_23 = arith.constant 0 : index
      %c0_24 = arith.constant 0 : index
      %c0_25 = arith.constant 0 : index
      %26 = vector.load %arg9[%c0_23, %c0_24, %c0_25] : memref<2x128x128xf32, #tpu.memory_space<vmem>>, vector<2x128x128xf32>
      tpu.vector_store %arg9[%c0_23, %c0_24, %c0_25], %25 {strides = array<i32>} : memref<2x128x128xf32, #tpu.memory_space<vmem>>, vector<2x128x128xf32>,
    } else {
    }
    %c0 = arith.constant 0 : index
    %c0_1 = arith.constant 0 : index
    %3 = vector.load %arg3[%c0, %c0_1] : memref<128x128xbf16, #tpu.memory_space<vmem>>, vector<128x128xbf16>
    %c0_2 = arith.constant 0 : index
    %c0_3 = arith.constant 0 : index
    %c0_4 = arith.constant 0 : index
    %4 = vector.load %arg9[%c0_2, %c0_3, %c0_4] : memref<2x128x128xf32, #tpu.memory_space<vmem>>, vector<1x128x128xf32>
    %5 = vector.shape_cast %4 : vector<1x128x128xf32> to vector<128x128xf32>
    %c0_5 = arith.constant 0 : index
    %c0_6 = arith.constant 0 : index
    %c0_7 = arith.constant 0 : index
    %6 = vector.load %arg2[%c0_5, %c0_6, %c0_7] : memref<2x128x128xbf16, #tpu.memory_space<vmem>>, vector<1x128x128xbf16>
    %7 = vector.shape_cast %6 : vector<1x128x128xbf16> to vector<128x128xbf16>
    %cst = arith.constant dense<0.000000e+00> : vector<128x128xf32>
    %8 = tpu.matmul %7, %3, %cst {dimension_numbers = #tpu.dot_dimension_numbers<[1], [0], [0], [1], [0, 0, 1, 1], [], []>} : vector<128x128xbf16>, vector<128x128xbf16>, vector<128x128xf32> -> vector<128x128xf32>
    %9 = arith.addf %5, %8 : vector<128x128xf32>
    %c0_8 = arith.constant 0 : index
    %c0_9 = arith.constant 0 : index
    %c0_10 = arith.constant 0 : index
    %10 = vector.load %arg9[%c0_8, %c0_9, %c0_10] : memref<2x128x128xf32, #tpu.memory_space<vmem>>, vector<1x128x128xf32>
    %11 = vector.shape_cast %10 : vector<1x128x128xf32> to vector<128x128xf32>
    %12 = vector.shape_cast %9 : vector<128x128xf32> to vector<1x128x128xf32>
    tpu.vector_store %arg9[%c0_8, %c0_9, %c0_10], %12 {strides = array<i32>} : memref<2x128x128xf32, #tpu.memory_space<vmem>>, vector<1x128x128xf32>,
    %c1 = arith.constant 1 : index
    %c0_11 = arith.constant 0 : index
    %c0_12 = arith.constant 0 : index
    %13 = vector.load %arg9[%c1, %c0_11, %c0_12] : memref<2x128x128xf32, #tpu.memory_space<vmem>>, vector<1x128x128xf32>
    %14 = vector.shape_cast %13 : vector<1x128x128xf32> to vector<128x128xf32>
    %c1_13 = arith.constant 1 : index
    %c0_14 = arith.constant 0 : index
    %c0_15 = arith.constant 0 : index
    %15 = vector.load %arg2[%c1_13, %c0_14, %c0_15] : memref<2x128x128xbf16, #tpu.memory_space<vmem>>, vector<1x128x128xbf16>
    %16 = vector.shape_cast %15 : vector<1x128x128xbf16> to vector<128x128xbf16>
    %cst_16 = arith.constant dense<0.000000e+00> : vector<128x128xf32>
    %17 = tpu.matmul %16, %3, %cst_16 {dimension_numbers = #tpu.dot_dimension_numbers<[1], [0], [0], [1], [0, 0, 1, 1], [], []>} : vector<128x128xbf16>, vector<128x128xbf16>, vector<128x128xf32> -> vector<128x128xf32>
    %18 = arith.addf %14, %17 : vector<128x128xf32>
    %c1_17 = arith.constant 1 : index
    %c0_18 = arith.constant 0 : index
    %c0_19 = arith.constant 0 : index
    %19 = vector.load %arg9[%c1_17, %c0_18, %c0_19] : memref<2x128x128xf32, #tpu.memory_space<vmem>>, vector<1x128x128xf32>
    %20 = vector.shape_cast %19 : vector<1x128x128xf32> to vector<128x128xf32>
    %21 = vector.shape_cast %18 : vector<128x128xf32> to vector<1x128x128xf32>
    tpu.vector_store %arg9[%c1_17, %c0_18, %c0_19], %21 {strides = array<i32>} : memref<2x128x128xf32, #tpu.memory_space<vmem>>, vector<1x128x128xf32>,
    %c0_i32_20 = arith.constant 0 : i32
    %22 = arith.cmpi eq, %arg1, %c0_i32_20 : i32
    %23 = arith.extui %22 : i1 to i32
    %c0_i32_21 = arith.constant 0 : i32
    %24 = arith.cmpi ne, %23, %c0_i32_21 : i32
    scf.if %24 {
      %c0_22 = arith.constant 0 : index
      %c0_23 = arith.constant 0 : index
      %25 = vector.load %arg4[%c0_22, %c0_23] : memref<128x128xbf16, #tpu.memory_space<vmem>>, vector<128x128xbf16>
      %c0_24 = arith.constant 0 : index
      %c0_25 = arith.constant 0 : index
      %26 = vector.load %arg6[%c0_24, %c0_25] : memref<128x128xbf16, #tpu.memory_space<vmem>>, vector<128x128xbf16>
      %cst_26 = arith.constant dense<0.000000e+00> : vector<128x128xf32>
      %27 = tpu.matmul %25, %26, %cst_26 {dimension_numbers = #tpu.dot_dimension_numbers<[1], [0], [0], [1], [0, 0, 1, 1], [], []>} : vector<128x128xbf16>, vector<128x128xbf16>, vector<128x128xf32> -> vector<128x128xf32>
      %c0_27 = arith.constant 0 : index
      %c0_28 = arith.constant 0 : index
      %28 = vector.load %arg7[%c0_27, %c0_28] : memref<1x128xf32, #tpu.memory_space<vmem>>, vector<1x128xf32>
      %29 = vector.broadcast %28 : vector<1x128xf32> to vector<128x128xf32>
      %30 = arith.addf %27, %29 : vector<128x128xf32>
      %c0_29 = arith.constant 0 : index
      %c0_30 = arith.constant 0 : index
      %c0_31 = arith.constant 0 : index
      %31 = vector.load %arg9[%c0_29, %c0_30, %c0_31] : memref<2x128x128xf32, #tpu.memory_space<vmem>>, vector<1x128x128xf32>
      %32 = vector.shape_cast %31 : vector<1x128x128xf32> to vector<128x128xf32>
      %33 = arith.truncf %32 : vector<128x128xf32> to vector<128x128xbf16>
      %c0_32 = arith.constant 0 : index
      %c0_33 = arith.constant 0 : index
      %c0_34 = arith.constant 0 : index
      %34 = vector.load %arg5[%c0_32, %c0_33, %c0_34] : memref<2x128x128xbf16, #tpu.memory_space<vmem>>, vector<1x128x128xbf16>
      %35 = vector.shape_cast %34 : vector<1x128x128xbf16> to vector<128x128xbf16>
      %cst_35 = arith.constant dense<0.000000e+00> : vector<128x128xf32>
      %36 = tpu.matmul %33, %35, %cst_35 {dimension_numbers = #tpu.dot_dimension_numbers<[1], [0], [0], [1], [0, 0, 1, 1], [], []>} : vector<128x128xbf16>, vector<128x128xbf16>, vector<128x128xf32> -> vector<128x128xf32>
      %37 = arith.addf %30, %36 : vector<128x128xf32>
      %c1_36 = arith.constant 1 : index
      %c0_37 = arith.constant 0 : index
      %c0_38 = arith.constant 0 : index
      %38 = vector.load %arg9[%c1_36, %c0_37, %c0_38] : memref<2x128x128xf32, #tpu.memory_space<vmem>>, vector<1x128x128xf32>
      %39 = vector.shape_cast %38 : vector<1x128x128xf32> to vector<128x128xf32>
      %40 = arith.truncf %39 : vector<128x128xf32> to vector<128x128xbf16>
      %c1_39 = arith.constant 1 : index
      %c0_40 = arith.constant 0 : index
      %c0_41 = arith.constant 0 : index
      %41 = vector.load %arg5[%c1_39, %c0_40, %c0_41] : memref<2x128x128xbf16, #tpu.memory_space<vmem>>, vector<1x128x128xbf16>
      %42 = vector.shape_cast %41 : vector<1x128x128xbf16> to vector<128x128xbf16>
      %cst_42 = arith.constant dense<0.000000e+00> : vector<128x128xf32>
      %43 = tpu.matmul %40, %42, %cst_42 {dimension_numbers = #tpu.dot_dimension_numbers<[1], [0], [0], [1], [0, 0, 1, 1], [], []>} : vector<128x128xbf16>, vector<128x128xbf16>, vector<128x128xf32> -> vector<128x128xf32>
      %44 = arith.addf %37, %43 : vector<128x128xf32>
      %cst_43 = arith.constant 0.000000e+00 : f32
      %45 = vector.broadcast %cst_43 : f32 to vector<128x128xf32>
      %46 = arith.maximumf %44, %45 : vector<128x128xf32>
      %47 = arith.truncf %46 : vector<128x128xf32> to vector<128x128xbf16>
      %c0_44 = arith.constant 0 : index
      %c0_45 = arith.constant 0 : index
      %48 = vector.load %arg8[%c0_44, %c0_45] : memref<128x128xbf16, #tpu.memory_space<vmem>>, vector<128x128xbf16>
      tpu.vector_store %arg8[%c0_44, %c0_45], %47 {strides = array<i32>} : memref<128x128xbf16, #tpu.memory_space<vmem>>, vector<128x128xbf16>,
    } else {
    }
    return
  }
  func.func @transform_0(%arg0: i32, %arg1: i32) -> (i32, i32, i32) {
    %c0_i32 = arith.constant 0 : i32
    %c0_i32_0 = arith.constant 0 : i32
    return %c0_i32, %arg0, %arg1 : i32, i32, i32
  }
  func.func @transform_1(%arg0: i32, %arg1: i32) -> (i32, i32) {
    %c0_i32 = arith.constant 0 : i32
    %c0_i32_0 = arith.constant 0 : i32
    return %arg1, %c0_i32 : i32, i32
  }
  func.func @transform_2(%arg0: i32, %arg1: i32) -> (i32, i32) {
    %c0_i32 = arith.constant 0 : i32
    %c0_i32_0 = arith.constant 0 : i32
    return %arg0, %c0_i32 : i32, i32
  }
  func.func @transform_3(%arg0: i32, %arg1: i32) -> (i32, i32, i32) {
    %c0_i32 = arith.constant 0 : i32
    %c0_i32_0 = arith.constant 0 : i32
    %c0_i32_1 = arith.constant 0 : i32
    %c0_i32_2 = arith.constant 0 : i32
    return %c0_i32, %c0_i32_0, %c0_i32_1 : i32, i32, i32
  }
  func.func @transform_4(%arg0: i32, %arg1: i32) -> (i32, i32) {
    %c0_i32 = arith.constant 0 : i32
    %c0_i32_0 = arith.constant 0 : i32
    %c0_i32_1 = arith.constant 0 : i32
    return %c0_i32, %c0_i32_0 : i32, i32
  }
  func.func @transform_5(%arg0: i32, %arg1: i32) -> (i32, i32) {
    %c0_i32 = arith.constant 0 : i32
    %c0_i32_0 = arith.constant 0 : i32
    %c0_i32_1 = arith.constant 0 : i32
    return %c0_i32, %c0_i32_0 : i32, i32
  }
  func.func @transform_6(%arg0: i32, %arg1: i32) -> (i32, i32) {
    %c0_i32 = arith.constant 0 : i32
    %c0_i32_0 = arith.constant 0 : i32
    return %arg0, %c0_i32 : i32, i32
  }
}

module attributes {stable_mosaic.version = 11 : i64} {
  func.func @rgcn_layer_kernel(%arg0: i32, %arg1: i32, %arg2: memref<2x128x128xbf16, #tpu.memory_space<vmem>>, %arg3: memref<128x128xbf16, #tpu.memory_space<vmem>>, %arg4: memref<128x128xbf16, #tpu.memory_space<vmem>>, %arg5: memref<2x128x128xbf16, #tpu.memory_space<vmem>>, %arg6: memref<128x128xbf16, #tpu.memory_space<vmem>>, %arg7: memref<1x128xf32, #tpu.memory_space<vmem>>, %arg8: memref<128x128xf32, #tpu.memory_space<vmem>>, %arg9: memref<2x128x128xf32, #tpu.memory_space<vmem>>) attributes {dimension_semantics = [#tpu.dimension_semantics<parallel>, #tpu.dimension_semantics<arbitrary>], iteration_bounds = array<i64: 1, 1>, scalar_prefetch = 0 : i64, scratch_operands = 1 : i64, tpu.core_type = #tpu.core_type<tc>, window_params = [{transform_indices = @transform_0, window_bounds = array<i64: 2, 128, 128>}, {transform_indices = @transform_1, window_bounds = array<i64: 128, 128>}, {transform_indices = @transform_2, window_bounds = array<i64: 128, 128>}, {pipeline_mode = #tpu.pipeline_mode<synchronous>, transform_indices = @transform_3, window_bounds = array<i64: 2, 128, 128>}, {pipeline_mode = #tpu.pipeline_mode<synchronous>, transform_indices = @transform_4, window_bounds = array<i64: 128, 128>}, {pipeline_mode = #tpu.pipeline_mode<synchronous>, transform_indices = @transform_5, window_bounds = array<i64: 1, 128>}, {transform_indices = @transform_6, window_bounds = array<i64: 128, 128>}]} {
    %c0_i32 = arith.constant 0 : i32
    %0 = arith.cmpi eq, %arg1, %c0_i32 : i32
    %1 = arith.extui %0 : i1 to i32
    %c0_i32_0 = arith.constant 0 : i32
    %2 = arith.cmpi ne, %1, %c0_i32_0 : i32
    scf.if %2 {
      %cst_22 = arith.constant 0.000000e+00 : f32
      %25 = vector.broadcast %cst_22 : f32 to vector<2x128x128xf32>
      %c0_23 = arith.constant 0 : index
      %c0_24 = arith.constant 0 : index
      %c0_25 = arith.constant 0 : index
      %26 = vector.load %arg9[%c0_23, %c0_24, %c0_25] : memref<2x128x128xf32, #tpu.memory_space<vmem>>, vector<2x128x128xf32>
      tpu.vector_store %arg9[%c0_23, %c0_24, %c0_25], %25 {strides = array<i32>} : memref<2x128x128xf32, #tpu.memory_space<vmem>>, vector<2x128x128xf32>,
    } else {
    }
    %c0 = arith.constant 0 : index
    %c0_1 = arith.constant 0 : index
    %3 = vector.load %arg3[%c0, %c0_1] : memref<128x128xbf16, #tpu.memory_space<vmem>>, vector<128x128xbf16>
    %c0_2 = arith.constant 0 : index
    %c0_3 = arith.constant 0 : index
    %c0_4 = arith.constant 0 : index
    %4 = vector.load %arg9[%c0_2, %c0_3, %c0_4] : memref<2x128x128xf32, #tpu.memory_space<vmem>>, vector<1x128x128xf32>
    %5 = vector.shape_cast %4 : vector<1x128x128xf32> to vector<128x128xf32>
    %c0_5 = arith.constant 0 : index
    %c0_6 = arith.constant 0 : index
    %c0_7 = arith.constant 0 : index
    %6 = vector.load %arg2[%c0_5, %c0_6, %c0_7] : memref<2x128x128xbf16, #tpu.memory_space<vmem>>, vector<1x128x128xbf16>
    %7 = vector.shape_cast %6 : vector<1x128x128xbf16> to vector<128x128xbf16>
    %cst = arith.constant dense<0.000000e+00> : vector<128x128xf32>
    %8 = tpu.matmul %7, %3, %cst {dimension_numbers = #tpu.dot_dimension_numbers<[1], [0], [0], [1], [0, 0, 1, 1], [], []>} : vector<128x128xbf16>, vector<128x128xbf16>, vector<128x128xf32> -> vector<128x128xf32>
    %9 = arith.addf %5, %8 : vector<128x128xf32>
    %c0_8 = arith.constant 0 : index
    %c0_9 = arith.constant 0 : index
    %c0_10 = arith.constant 0 : index
    %10 = vector.load %arg9[%c0_8, %c0_9, %c0_10] : memref<2x128x128xf32, #tpu.memory_space<vmem>>, vector<1x128x128xf32>
    %11 = vector.shape_cast %10 : vector<1x128x128xf32> to vector<128x128xf32>
    %12 = vector.shape_cast %9 : vector<128x128xf32> to vector<1x128x128xf32>
    tpu.vector_store %arg9[%c0_8, %c0_9, %c0_10], %12 {strides = array<i32>} : memref<2x128x128xf32, #tpu.memory_space<vmem>>, vector<1x128x128xf32>,
    %c1 = arith.constant 1 : index
    %c0_11 = arith.constant 0 : index
    %c0_12 = arith.constant 0 : index
    %13 = vector.load %arg9[%c1, %c0_11, %c0_12] : memref<2x128x128xf32, #tpu.memory_space<vmem>>, vector<1x128x128xf32>
    %14 = vector.shape_cast %13 : vector<1x128x128xf32> to vector<128x128xf32>
    %c1_13 = arith.constant 1 : index
    %c0_14 = arith.constant 0 : index
    %c0_15 = arith.constant 0 : index
    %15 = vector.load %arg2[%c1_13, %c0_14, %c0_15] : memref<2x128x128xbf16, #tpu.memory_space<vmem>>, vector<1x128x128xbf16>
    %16 = vector.shape_cast %15 : vector<1x128x128xbf16> to vector<128x128xbf16>
    %cst_16 = arith.constant dense<0.000000e+00> : vector<128x128xf32>
    %17 = tpu.matmul %16, %3, %cst_16 {dimension_numbers = #tpu.dot_dimension_numbers<[1], [0], [0], [1], [0, 0, 1, 1], [], []>} : vector<128x128xbf16>, vector<128x128xbf16>, vector<128x128xf32> -> vector<128x128xf32>
    %18 = arith.addf %14, %17 : vector<128x128xf32>
    %c1_17 = arith.constant 1 : index
    %c0_18 = arith.constant 0 : index
    %c0_19 = arith.constant 0 : index
    %19 = vector.load %arg9[%c1_17, %c0_18, %c0_19] : memref<2x128x128xf32, #tpu.memory_space<vmem>>, vector<1x128x128xf32>
    %20 = vector.shape_cast %19 : vector<1x128x128xf32> to vector<128x128xf32>
    %21 = vector.shape_cast %18 : vector<128x128xf32> to vector<1x128x128xf32>
    tpu.vector_store %arg9[%c1_17, %c0_18, %c0_19], %21 {strides = array<i32>} : memref<2x128x128xf32, #tpu.memory_space<vmem>>, vector<1x128x128xf32>,
    %c0_i32_20 = arith.constant 0 : i32
    %22 = arith.cmpi eq, %arg1, %c0_i32_20 : i32
    %23 = arith.extui %22 : i1 to i32
    %c0_i32_21 = arith.constant 0 : i32
    %24 = arith.cmpi ne, %23, %c0_i32_21 : i32
    scf.if %24 {
      %c0_22 = arith.constant 0 : index
      %c0_23 = arith.constant 0 : index
      %25 = vector.load %arg4[%c0_22, %c0_23] : memref<128x128xbf16, #tpu.memory_space<vmem>>, vector<128x128xbf16>
      %c0_24 = arith.constant 0 : index
      %c0_25 = arith.constant 0 : index
      %26 = vector.load %arg6[%c0_24, %c0_25] : memref<128x128xbf16, #tpu.memory_space<vmem>>, vector<128x128xbf16>
      %cst_26 = arith.constant dense<0.000000e+00> : vector<128x128xf32>
      %27 = tpu.matmul %25, %26, %cst_26 {dimension_numbers = #tpu.dot_dimension_numbers<[1], [0], [0], [1], [0, 0, 1, 1], [], []>} : vector<128x128xbf16>, vector<128x128xbf16>, vector<128x128xf32> -> vector<128x128xf32>
      %c0_27 = arith.constant 0 : index
      %c0_28 = arith.constant 0 : index
      %28 = vector.load %arg7[%c0_27, %c0_28] : memref<1x128xf32, #tpu.memory_space<vmem>>, vector<1x128xf32>
      %29 = vector.broadcast %28 : vector<1x128xf32> to vector<128x128xf32>
      %30 = arith.addf %27, %29 : vector<128x128xf32>
      %c0_29 = arith.constant 0 : index
      %c0_30 = arith.constant 0 : index
      %c0_31 = arith.constant 0 : index
      %31 = vector.load %arg9[%c0_29, %c0_30, %c0_31] : memref<2x128x128xf32, #tpu.memory_space<vmem>>, vector<1x128x128xf32>
      %32 = vector.shape_cast %31 : vector<1x128x128xf32> to vector<128x128xf32>
      %33 = arith.truncf %32 : vector<128x128xf32> to vector<128x128xbf16>
      %c0_32 = arith.constant 0 : index
      %c0_33 = arith.constant 0 : index
      %c0_34 = arith.constant 0 : index
      %34 = vector.load %arg5[%c0_32, %c0_33, %c0_34] : memref<2x128x128xbf16, #tpu.memory_space<vmem>>, vector<1x128x128xbf16>
      %35 = vector.shape_cast %34 : vector<1x128x128xbf16> to vector<128x128xbf16>
      %cst_35 = arith.constant dense<0.000000e+00> : vector<128x128xf32>
      %36 = tpu.matmul %33, %35, %cst_35 {dimension_numbers = #tpu.dot_dimension_numbers<[1], [0], [0], [1], [0, 0, 1, 1], [], []>} : vector<128x128xbf16>, vector<128x128xbf16>, vector<128x128xf32> -> vector<128x128xf32>
      %37 = arith.addf %30, %36 : vector<128x128xf32>
      %c1_36 = arith.constant 1 : index
      %c0_37 = arith.constant 0 : index
      %c0_38 = arith.constant 0 : index
      %38 = vector.load %arg9[%c1_36, %c0_37, %c0_38] : memref<2x128x128xf32, #tpu.memory_space<vmem>>, vector<1x128x128xf32>
      %39 = vector.shape_cast %38 : vector<1x128x128xf32> to vector<128x128xf32>
      %40 = arith.truncf %39 : vector<128x128xf32> to vector<128x128xbf16>
      %c1_39 = arith.constant 1 : index
      %c0_40 = arith.constant 0 : index
      %c0_41 = arith.constant 0 : index
      %41 = vector.load %arg5[%c1_39, %c0_40, %c0_41] : memref<2x128x128xbf16, #tpu.memory_space<vmem>>, vector<1x128x128xbf16>
      %42 = vector.shape_cast %41 : vector<1x128x128xbf16> to vector<128x128xbf16>
      %cst_42 = arith.constant dense<0.000000e+00> : vector<128x128xf32>
      %43 = tpu.matmul %40, %42, %cst_42 {dimension_numbers = #tpu.dot_dimension_numbers<[1], [0], [0], [1], [0, 0, 1, 1], [], []>} : vector<128x128xbf16>, vector<128x128xbf16>, vector<128x128xf32> -> vector<128x128xf32>
      %44 = arith.addf %37, %43 : vector<128x128xf32>
      %c0_43 = arith.constant 0 : index
      %c0_44 = arith.constant 0 : index
      %45 = vector.load %arg8[%c0_43, %c0_44] : memref<128x128xf32, #tpu.memory_space<vmem>>, vector<128x128xf32>
      tpu.vector_store %arg8[%c0_43, %c0_44], %44 {strides = array<i32>} : memref<128x128xf32, #tpu.memory_space<vmem>>, vector<128x128xf32>,
    } else {
    }
    return
  }
  func.func @transform_0(%arg0: i32, %arg1: i32) -> (i32, i32, i32) {
    %c0_i32 = arith.constant 0 : i32
    %c0_i32_0 = arith.constant 0 : i32
    return %c0_i32, %arg0, %arg1 : i32, i32, i32
  }
  func.func @transform_1(%arg0: i32, %arg1: i32) -> (i32, i32) {
    %c0_i32 = arith.constant 0 : i32
    %c0_i32_0 = arith.constant 0 : i32
    return %arg1, %c0_i32 : i32, i32
  }
  func.func @transform_2(%arg0: i32, %arg1: i32) -> (i32, i32) {
    %c0_i32 = arith.constant 0 : i32
    %c0_i32_0 = arith.constant 0 : i32
    return %arg0, %c0_i32 : i32, i32
  }
  func.func @transform_3(%arg0: i32, %arg1: i32) -> (i32, i32, i32) {
    %c0_i32 = arith.constant 0 : i32
    %c0_i32_0 = arith.constant 0 : i32
    %c0_i32_1 = arith.constant 0 : i32
    %c0_i32_2 = arith.constant 0 : i32
    return %c0_i32, %c0_i32_0, %c0_i32_1 : i32, i32, i32
  }
  func.func @transform_4(%arg0: i32, %arg1: i32) -> (i32, i32) {
    %c0_i32 = arith.constant 0 : i32
    %c0_i32_0 = arith.constant 0 : i32
    %c0_i32_1 = arith.constant 0 : i32
    return %c0_i32, %c0_i32_0 : i32, i32
  }
  func.func @transform_5(%arg0: i32, %arg1: i32) -> (i32, i32) {
    %c0_i32 = arith.constant 0 : i32
    %c0_i32_0 = arith.constant 0 : i32
    %c0_i32_1 = arith.constant 0 : i32
    return %c0_i32, %c0_i32_0 : i32, i32
  }
  func.func @transform_6(%arg0: i32, %arg1: i32) -> (i32, i32) {
    %c0_i32 = arith.constant 0 : i32
    %c0_i32_0 = arith.constant 0 : i32
    return %arg0, %c0_i32 : i32, i32
  }
}

</mosaic_0001>

<bundles_post_ra>
// kernel: rgcn_forward_pallas.3
= control target key start
LH: loop header
LB: loop body
LE: loop exit
PB: predicated region body
PF: predicated region fallthrough
CT: control target
= control target key end

     0   :  { %s1567_s1 = inlined_call_operand.vmem [shape: bf16[128,128], index: 1, kind: input, shape index: {}, may-alias: {1,2}]   ;;  %s1568_s0 = inlined_call_operand.vmem [shape: bf16[2,128,128], index: 0, kind: input, shape index: {}]   ;;  %s1569_s4 = inlined_call_operand.vmem [shape: bf16[128,128], index: 4, kind: input, shape index: {}]   ;;  %s1570_s3 = inlined_call_operand.vmem [shape: bf16[2,128,128], index: 3, kind: input, shape index: {}]   ;;  %s1571_s2 = inlined_call_operand.vmem [shape: bf16[128,128], index: 2, kind: input, shape index: {}, may-alias: {1,2}]   ;;  %s1572_s5 = inlined_call_operand.vmem [shape: f32[1,128], index: 5, kind: input, shape index: {}]   ;;  %s1573_s6 = inlined_call_operand.vmem [shape: f32[128,128], index: 6, kind: output, shape index: {}]  }
   0x1   :  { %v1221_v0 = vld [vmem:[%s1567_s1 + $0x38] sm:$0xff]  ;;  %v1220_v1 = vld [vmem:[%s1567_s1 + $0x30] sm:$0xff]  ;;  %v1219_v2 = vld [vmem:[%s1567_s1 + $0x28] sm:$0xff] }
   0x2   :  { %203 = vmatpush.bf16.msra.mxu0 %v1221_v0  ;;  %1270 = vmatpush.bf16.msra.mxu1 %v1221_v0  ;;  %v1218_v3 = vld [vmem:[%s1567_s1 + $0x20] sm:$0xff]  ;;  %v1217_v4 = vld [vmem:[%s1567_s1 + $0x18] sm:$0xff]  ;;  %v1216_v5 = vld [vmem:[%s1567_s1 + $0x10] sm:$0xff] }
   0x3   :  { %1271 = vmatpush.bf16.msra.mxu2 %v1221_v0  ;;  %1272 = vmatpush.bf16.msra.mxu3 %v1221_v0  ;;  %v1215_v6 = vld [vmem:[%s1567_s1 + $0x8] sm:$0xff]  ;;  %v1214_v7 = vld [vmem:[%s1567_s1] sm:$0xff]  ;;  %v1224_v9 = vld [vmem:[%s1568_s0 + $0x10] sm:$0xff] }
   0x4   :  { %v1222_v8 = vld [vmem:[%s1568_s0] sm:$0xff]  ;;  %v1223_v10 = vld [vmem:[%s1568_s0 + $0x8] sm:$0xff]  ;;  %v1225_v11 = vld [vmem:[%s1568_s0 + $0x18] sm:$0xff] }
   0x5   :  { %v1230_v12 = vld [vmem:[%s1568_s0 + $0x40] sm:$0xff]  ;;  %v1231_v14 = vld [vmem:[%s1568_s0 + $0x48] sm:$0xff]  ;;  %v1232_v16 = vld [vmem:[%s1568_s0 + $0x50] sm:$0xff] }
   0x6   :  { %204 = vmatpush.bf16.msra.mxu0 %v1220_v1  ;;  %1273 = vmatpush.bf16.msra.mxu1 %v1220_v1  ;;  %v1226_v13 = vld [vmem:[%s1568_s0 + $0x20] sm:$0xff]  ;;  %v1227_v15 = vld [vmem:[%s1568_s0 + $0x28] sm:$0xff]  ;;  %v1228_v17 = vld [vmem:[%s1568_s0 + $0x30] sm:$0xff] }
   0x7   :  { %1274 = vmatpush.bf16.msra.mxu2 %v1220_v1  ;;  %1275 = vmatpush.bf16.msra.mxu3 %v1220_v1  ;;  %v1253_v18 = vld [vmem:[%s1569_s4 + $0x38] sm:$0xff]  ;;  %v1252_v20 = vld [vmem:[%s1569_s4 + $0x30] sm:$0xff]  ;;  %v1251_v22 = vld [vmem:[%s1569_s4 + $0x28] sm:$0xff] }
   0x8   :  { %v1261_v19 = vld [vmem:[%s1570_s3 + $0x38] sm:$0xff]  ;;  %v1260_v21 = vld [vmem:[%s1570_s3 + $0x30] sm:$0xff]  ;;  %v1259_v24 = vld [vmem:[%s1570_s3 + $0x28] sm:$0xff] }
   0x9   :  { %v1233_v23 = vld [vmem:[%s1568_s0 + $0x58] sm:$0xff]  ;;  %v1250_v26 = vld [vmem:[%s1569_s4 + $0x20] sm:$0xff]  ;;  %v1248_v30 = vld [vmem:[%s1569_s4 + $0x10] sm:$0xff] }
   0xa   :  { %205 = vmatpush.bf16.msra.mxu0 %v1219_v2  ;;  %1276 = vmatpush.bf16.msra.mxu1 %v1219_v2  ;;  %v1229_v25 = vld [vmem:[%s1568_s0 + $0x38] sm:$0xff]  ;;  %v1258_v27 = vld [vmem:[%s1570_s3 + $0x20] sm:$0xff]  ;;  %v1256_v31 = vld [vmem:[%s1570_s3 + $0x10] sm:$0xff] }
   0xb   :  { %1277 = vmatpush.bf16.msra.mxu2 %v1219_v2  ;;  %1278 = vmatpush.bf16.msra.mxu3 %v1219_v2  ;;  %v1249_v28 = vld [vmem:[%s1569_s4 + $0x18] sm:$0xff]  ;;  %v1234_v32 = vld [vmem:[%s1568_s0 + $0x60] sm:$0xff]  ;;  %v1247_v33 = vld [vmem:[%s1569_s4 + $0x8] sm:$0xff] }
   0xc   :  { %v1257_v29 = vld [vmem:[%s1570_s3 + $0x18] sm:$0xff]  ;;  %v1255_v34 = vld [vmem:[%s1570_s3 + $0x8] sm:$0xff]  ;;  %v1246_v35 = vld [vmem:[%s1569_s4] sm:$0xff] }
   0xd   :  { %v1254_v36 = vld [vmem:[%s1570_s3] sm:$0xff]  ;;  %v1269_v38 = vld [vmem:[%s1570_s3 + $0x78] sm:$0xff]  ;;  %v1268_v39 = vld [vmem:[%s1570_s3 + $0x70] sm:$0xff] }
   0xe   :  { %206 = vmatpush.bf16.msra.mxu0 %v1218_v3  ;;  %1279 = vmatpush.bf16.msra.mxu1 %v1218_v3  ;;  %v1238_v37 = vld [vmem:[%s1571_s2] sm:$0xff]  ;;  %v1235_v40 = vld [vmem:[%s1568_s0 + $0x68] sm:$0xff]  ;;  %v1265_v44 = vld [vmem:[%s1570_s3 + $0x58] sm:$0xff] }
   0xf   :  { %1280 = vmatpush.bf16.msra.mxu2 %v1218_v3  ;;  %1281 = vmatpush.bf16.msra.mxu3 %v1218_v3  ;;  %v1267_v41 = vld [vmem:[%s1570_s3 + $0x68] sm:$0xff]  ;;  %v1266_v42 = vld [vmem:[%s1570_s3 + $0x60] sm:$0xff]  ;;  %v1264_v45 = vld [vmem:[%s1570_s3 + $0x50] sm:$0xff] }
  0x10   :  { %v1239_v43 = vld [vmem:[%s1571_s2 + $0x8] sm:$0xff]  ;;  %v1236_v46 = vld [vmem:[%s1568_s0 + $0x70] sm:$0xff]  ;;  %v1262_v50 = vld [vmem:[%s1570_s3 + $0x40] sm:$0xff] }
  0x11   :  { %v1263_v49 = vld [vmem:[%s1570_s3 + $0x48] sm:$0xff]  ;;  %v1240_v51 = vld [vmem:[%s1571_s2 + $0x10] sm:$0xff]  ;;  %v1237_v55 = vld [vmem:[%s1568_s0 + $0x78] sm:$0xff] }
  0x12   :  { %207 = vmatpush.bf16.msra.mxu0 %v1217_v4  ;;  %1282 = vmatpush.bf16.msra.mxu1 %v1217_v4  ;;  %v1241_v58 = vld [vmem:[%s1571_s2 + $0x18] sm:$0xff] }
  0x13   :  { %1283 = vmatpush.bf16.msra.mxu2 %v1217_v4  ;;  %1284 = vmatpush.bf16.msra.mxu3 %v1217_v4 }
  0x16   :  { %208 = vmatpush.bf16.msra.mxu0 %v1216_v5  ;;  %1285 = vmatpush.bf16.msra.mxu1 %v1216_v5 }
  0x17   :  { %1286 = vmatpush.bf16.msra.mxu2 %v1216_v5  ;;  %1287 = vmatpush.bf16.msra.mxu3 %v1216_v5 }
  0x1a   :  { %209 = vmatpush.bf16.msra.mxu0 %v1215_v6  ;;  %1288 = vmatpush.bf16.msra.mxu1 %v1215_v6 }
  0x1b   :  { %1289 = vmatpush.bf16.msra.mxu2 %v1215_v6  ;;  %1290 = vmatpush.bf16.msra.mxu3 %v1215_v6 }
  0x1e   :  { %210 = vmatpush.bf16.msra.mxu0 %v1214_v7  ;;  %1291 = vmatpush.bf16.msra.mxu1 %v1214_v7 }
  0x1f   :  { %1292 = vmatpush.bf16.msra.mxu2 %v1214_v7  ;;  %1293 = vmatpush.bf16.msra.mxu3 %v1214_v7 }
  0x21   :  { %211 = vmatmul.bf16.vlgmr.msra.gmra.mxu0 %v1222_v8  ;;  %221 = vmatmul.bf16.vlgmr.msra.gmra.mxu1 %v1224_v9  ;;  %v1243_v8 = vld [vmem:[%s1571_s2 + $0x28] sm:$0xff] }
  0x22   :  { %366 = vmatpush.bf16.msrb.mxu1 %v1221_v0  ;;  %231 = vmatmul.bf16.vlgmr.msra.gmra.mxu2 %v1226_v13 }
  0x23   :  { %241 = vmatmul.bf16.vlgmr.msra.gmra.mxu3 %v1228_v17  ;;  %582 = vmatpush.bf16.msrb.mxu2 %v1253_v18 }
  0x24   :  { %719 = vmatpush.bf16.msrb.mxu3 %v1261_v19  ;;  %873 = vmatpush.bf16.msrb.mxu0 %v1269_v38 }
  0x26   :  { %367 = vmatpush.bf16.msrb.mxu1 %v1220_v1 }
  0x27   :  { %583 = vmatpush.bf16.msrb.mxu2 %v1252_v20 }
  0x28   :  { %720 = vmatpush.bf16.msrb.mxu3 %v1260_v21  ;;  %874 = vmatpush.bf16.msrb.mxu0 %v1268_v39 }
  0x2a   :  { %368 = vmatpush.bf16.msrb.mxu1 %v1219_v2  ;;  %v1242_v2 = vld [vmem:[%s1571_s2 + $0x20] sm:$0xff] }
  0x2b   :  { %584 = vmatpush.bf16.msrb.mxu2 %v1251_v22  ;;  %v1245_v22 = vld [vmem:[%s1571_s2 + $0x38] sm:$0xff] }
  0x2c   :  { %721 = vmatpush.bf16.msrb.mxu3 %v1259_v24  ;;  %875 = vmatpush.bf16.msrb.mxu0 %v1267_v41 }
  0x2e   :  { %369 = vmatpush.bf16.msrb.mxu1 %v1218_v3 }
  0x2f   :  { %585 = vmatpush.bf16.msrb.mxu2 %v1250_v26 }
  0x30   :  { %722 = vmatpush.bf16.msrb.mxu3 %v1258_v27  ;;  %876 = vmatpush.bf16.msrb.mxu0 %v1266_v42 }
  0x31   :  { %216 = vmatmul.bf16.gmra.mxu0 %v1223_v10  ;;  %226 = vmatmul.bf16.gmra.mxu1 %v1225_v11 }
  0x32   :  { %370 = vmatpush.bf16.msrb.mxu1 %v1217_v4  ;;  %236 = vmatmul.bf16.gmra.mxu2 %v1227_v15  ;;  %v1244_v15 = vld [vmem:[%s1571_s2 + $0x30] sm:$0xff] }
  0x33   :  { %246 = vmatmul.bf16.gmra.mxu3 %v1229_v25  ;;  %586 = vmatpush.bf16.msrb.mxu2 %v1249_v28 }
  0x34   :  { %723 = vmatpush.bf16.msrb.mxu3 %v1257_v29  ;;  %877 = vmatpush.bf16.msrb.mxu0 %v1265_v44 }
  0x36   :  { %371 = vmatpush.bf16.msrb.mxu1 %v1216_v5 }
  0x37   :  { %587 = vmatpush.bf16.msrb.mxu2 %v1248_v30 }
  0x38   :  { %724 = vmatpush.bf16.msrb.mxu3 %v1256_v31  ;;  %878 = vmatpush.bf16.msrb.mxu0 %v1264_v45 }
  0x3a   :  { %372 = vmatpush.bf16.msrb.mxu1 %v1215_v6 }
  0x3b   :  { %588 = vmatpush.bf16.msrb.mxu2 %v1247_v33 }
  0x3c   :  { %725 = vmatpush.bf16.msrb.mxu3 %v1255_v34  ;;  %879 = vmatpush.bf16.msrb.mxu0 %v1263_v49 }
  0x3e   :  { %373 = vmatpush.bf16.msrb.mxu1 %v1214_v7 }
  0x3f   :  { %589 = vmatpush.bf16.msrb.mxu2 %v1246_v35 }
  0x40   :  { %726 = vmatpush.bf16.msrb.mxu3 %v1254_v36  ;;  %880 = vmatpush.bf16.msrb.mxu0 %v1262_v50 }
  0x41   :  { %374 = vmatmul.bf16.vlgmr.msrb.gmra.mxu1 %v1230_v12 }
  0x42   :  { %590 = vmatmul.bf16.vlgmr.msrb.gmra.mxu2 %v1238_v37 }
  0x51   :  { %379 = vmatmul.bf16.gmra.mxu1 %v1231_v14 }
  0x52   :  { %595 = vmatmul.bf16.gmra.mxu2 %v1239_v43 }
  0x61   :  { %384 = vmatmul.bf16.gmra.mxu1 %v1232_v16 }
  0x62   :  { %600 = vmatmul.bf16.gmra.mxu2 %v1240_v51 }
  0x71   :  { %389 = vmatmul.bf16.gmra.mxu1 %v1233_v23 }
  0x72   :  { %605 = vmatmul.bf16.gmra.mxu2 %v1241_v58 }
  0x81   :  { %394 = vmatmul.bf16.gmra.mxu1 %v1234_v32 }
  0x82   :  { %610 = vmatmul.bf16.gmra.mxu2 %v1242_v2 }
  0x91   :  { %399 = vmatmul.bf16.gmra.mxu1 %v1235_v40 }
  0x92   :  { %615 = vmatmul.bf16.gmra.mxu2 %v1243_v8 }
  0x9e   :  { %v212_v47 = vpop.f32.mrf.mxu0  ;;  %v222_v48 = vpop.f32.mrf.mxu1 }
  0xa1   :  { %404 = vmatmul.bf16.gmra.mxu1 %v1236_v46  ;;  %v1501_v46 = vld [vmem:[%s1572_s5] ss:$0 sm:$0xff] }
  0xa2   :  { %620 = vmatmul.bf16.gmra.mxu2 %v1244_v15 }
  0xa5   :  { %v232_v4 = vpop.f32.mrf.mxu2 }
  0xa6   :  { %v214_v52 = vpop.f32.mrf.mxu0  ;;  %v224_v53 = vpop.f32.mrf.mxu1 }
  0xa7   :  { %v647_v54 = vpack.c.bf16 %v214_v52, %v212_v47  ;;  %v649_v0 = vpack.c.bf16 %v224_v53, %v222_v48  ;;  %v242_v18 = vpop.f32.mrf.mxu3 }
  0xa9   :  { %727 = vmatmul.bf16.vlgmr.msrb.gmra.mxu3 %v647_v54 }
  0xad   :  { %v234_v10 = vpop.f32.mrf.mxu2 }
  0xae   :  { %v217_v56 = vpop.f32.mrf.mxu0  ;;  %v227_v57 = vpop.f32.mrf.mxu1  ;;  %v651_v11 = vpack.c.bf16 %v234_v10, %v232_v4 }
  0xaf   :  { %v244_v24 = vpop.f32.mrf.mxu3 }
  0xb0   :  { %v653_v25 = vpack.c.bf16 %v244_v24, %v242_v18 }
  0xb1   :  { %409 = vmatmul.bf16.gmra.mxu1 %v1237_v55 }
  0xb2   :  { %625 = vmatmul.bf16.gmra.mxu2 %v1245_v22 }
  0xb5   :  { %v237_v14 = vpop.f32.mrf.mxu2 }
  0xb6   :  { %v219_v59 = vpop.f32.mrf.mxu0  ;;  %v229_v60 = vpop.f32.mrf.mxu1 }
  0xb7   :  { %v648_v61 = vpack.c.bf16 %v219_v59, %v217_v56  ;;  %v650_v6 = vpack.c.bf16 %v229_v60, %v227_v57  ;;  %v247_v28 = vpop.f32.mrf.mxu3 }
  0xb9   :  { %732 = vmatmul.bf16.gmra.mxu3 %v648_v61 }
  0xbd   :  { %v239_v17 = vpop.f32.mrf.mxu2 }
  0xbe   :  { %v375_v62 = vpop.f32.mrf.mxu1  ;;  %v652_v19 = vpack.c.bf16 %v239_v17, %v237_v14 }
  0xbf   :  { %v249_v30 = vpop.f32.mrf.mxu3 }
  0xc0   :  { %v654_v31 = vpack.c.bf16 %v249_v30, %v247_v28 }
  0xc5   :  { %v591_v35 = vpop.f32.mrf.mxu2 }
  0xc6   :  { %v377_v63 = vpop.f32.mrf.mxu1  ;;  %v592_v48 = vadd.f32 %v1501_v46, %v591_v35 }
  0xc7   :  { %v800_v1 = vpack.c.bf16 %v377_v63, %v375_v62 }
  0xc9   :  { %737 = vmatmul.bf16.gmra.mxu3 %v649_v0  ;;  %881 = vmatmul.bf16.vlgmr.msrb.gmra.mxu0 %v800_v1 }
  0xcd   :  { %v593_v39 = vpop.f32.mrf.mxu2 }
  0xce   :  { %v380_v3 = vpop.f32.mrf.mxu1  ;;  %v594_v53 = vadd.f32 %v1501_v46, %v593_v39 }
  0xd5   :  { %v596_v43 = vpop.f32.mrf.mxu2 }
  0xd6   :  { %v382_v5 = vpop.f32.mrf.mxu1  ;;  %v597_v59 = vadd.f32 %v1501_v46, %v596_v43 }
  0xd7   :  { %v801_v7 = vpack.c.bf16 %v382_v5, %v380_v3 }
  0xd9   :  { %742 = vmatmul.bf16.gmra.mxu3 %v650_v6  ;;  %886 = vmatmul.bf16.gmra.mxu0 %v801_v7 }
  0xdd   :  { %v598_v47 = vpop.f32.mrf.mxu2 }
  0xde   :  { %v385_v9 = vpop.f32.mrf.mxu1  ;;  %v599_v1 = vadd.f32 %v1501_v46, %v598_v47 }
  0xe5   :  { %v601_v54 = vpop.f32.mrf.mxu2 }
  0xe6   :  { %v387_v12 = vpop.f32.mrf.mxu1  ;;  %v602_v6 = vadd.f32 %v1501_v46, %v601_v54 }
  0xe7   :  { %v802_v13 = vpack.c.bf16 %v387_v12, %v385_v9 }
  0xe9   :  { %891 = vmatmul.bf16.gmra.mxu0 %v802_v13  ;;  %747 = vmatmul.bf16.gmra.mxu3 %v651_v11 }
  0xed   :  { %v603_v60 = vpop.f32.mrf.mxu2 }
  0xee   :  { %v390_v16 = vpop.f32.mrf.mxu1  ;;  %v604_v12 = vadd.f32 %v1501_v46, %v603_v60 }
  0xf5   :  { %v606_v3 = vpop.f32.mrf.mxu2 }
  0xf6   :  { %v392_v20 = vpop.f32.mrf.mxu1  ;;  %v607_v18 = vadd.f32 %v1501_v46, %v606_v3 }
  0xf7   :  { %v803_v21 = vpack.c.bf16 %v392_v20, %v390_v16 }
  0xf9   :  { %896 = vmatmul.bf16.gmra.mxu0 %v803_v21  ;;  %752 = vmatmul.bf16.gmra.mxu3 %v652_v19 }
  0xfd   :  { %v608_v11 = vpop.f32.mrf.mxu2 }
  0xfe   :  { %v395_v23 = vpop.f32.mrf.mxu1 }
 0x105   :  { %v611_v17 = vpop.f32.mrf.mxu2 }
 0x106   :  { %v397_v26 = vpop.f32.mrf.mxu1 }
 0x107   :  { %v804_v27 = vpack.c.bf16 %v397_v26, %v395_v23  ;;  %v609_v23 = vadd.f32 %v1501_v46, %v608_v11 }
 0x109   :  { %901 = vmatmul.bf16.gmra.mxu0 %v804_v27  ;;  %757 = vmatmul.bf16.gmra.mxu3 %v653_v25 }
 0x10d   :  { %v613_v24 = vpop.f32.mrf.mxu2 }
 0x10e   :  { %v400_v29 = vpop.f32.mrf.mxu1  ;;  %v614_v35 = vadd.f32 %v1501_v46, %v613_v24 }
 0x115   :  { %v616_v30 = vpop.f32.mrf.mxu2 }
 0x116   :  { %v402_v32 = vpop.f32.mrf.mxu1 }
 0x117   :  { %v805_v33 = vpack.c.bf16 %v402_v32, %v400_v29  ;;  %v612_v29 = vadd.f32 %v1501_v46, %v611_v17 }
 0x119   :  { %906 = vmatmul.bf16.gmra.mxu0 %v805_v33  ;;  %762 = vmatmul.bf16.gmra.mxu3 %v654_v31 }
 0x11e   :  { %v405_v34 = vpop.f32.mrf.mxu1 }
 0x126   :  { %v407_v36 = vpop.f32.mrf.mxu1 }
 0x127   :  { %v806_v37 = vpack.c.bf16 %v407_v36, %v405_v34 }
 0x129   :  { %911 = vmatmul.bf16.gmra.mxu0 %v806_v37  ;;  %v618_v37 = vpop.f32.mrf.mxu2 }
 0x12a   :  { %v619_v47 = vadd.f32 %v1501_v46, %v618_v37 }
 0x12c   :  { %v728_v38 = vpop.f32.mrf.mxu3 }
 0x12d   :  { %v768_v50 = vadd.f32 %v728_v38, %v592_v48 }
 0x12e   :  { %v410_v40 = vpop.f32.mrf.mxu1 }
 0x134   :  { %v730_v41 = vpop.f32.mrf.mxu3 }
 0x135   :  { %v769_v55 = vadd.f32 %v730_v41, %v594_v53 }
 0x136   :  { %v412_v42 = vpop.f32.mrf.mxu1 }
 0x137   :  { %v807_v44 = vpack.c.bf16 %v412_v42, %v410_v40  ;;  %v617_v40 = vadd.f32 %v1501_v46, %v616_v30 }
 0x139   :  { %916 = vmatmul.bf16.gmra.mxu0 %v807_v44 }
 0x13c   :  { %v733_v45 = vpop.f32.mrf.mxu3 }
 0x13d   :  { %v770_v61 = vadd.f32 %v733_v45, %v597_v59  ;;  %v621_v45 = vpop.f32.mrf.mxu2 }
 0x144   :  { %v735_v49 = vpop.f32.mrf.mxu3 }
 0x145   :  { %v771_v2 = vadd.f32 %v735_v49, %v599_v1  ;;  %v623_v53 = vpop.f32.mrf.mxu2 }
 0x146   :  { %v882_v51 = vpop.f32.mrf.mxu0 }
 0x147   :  { %v922_v52 = vadd.f32 %v882_v51, %v768_v50 }
 0x149   :  { %938 = vst [vmem:[%s1573_s6] sm:$0xff] %v922_v52  ;;  %v622_v52 = vadd.f32 %v1501_v46, %v621_v45 }
 0x14c   :  { %v738_v56 = vpop.f32.mrf.mxu3 }
 0x14d   :  { %v772_v8 = vadd.f32 %v738_v56, %v602_v6  ;;  %v626_v59 = vpop.f32.mrf.mxu2 }
 0x14e   :  { %v884_v57 = vpop.f32.mrf.mxu0 }
 0x14f   :  { %v923_v58 = vadd.f32 %v884_v57, %v769_v55 }
 0x151   :  { %939 = vst [vmem:[%s1573_s6 + $0x8] sm:$0xff] %v923_v58  ;;  %v624_v58 = vadd.f32 %v1501_v46, %v623_v53 }
 0x154   :  { %v740_v0 = vpop.f32.mrf.mxu3 }
 0x155   :  { %v773_v14 = vadd.f32 %v740_v0, %v604_v12  ;;  %v627_v0 = vadd.f32 %v1501_v46, %v626_v59 }
 0x156   :  { %v887_v62 = vpop.f32.mrf.mxu0 }
 0x157   :  { %v924_v63 = vadd.f32 %v887_v62, %v770_v61 }
 0x159   :  { %940 = vst [vmem:[%s1573_s6 + $0x10] sm:$0xff] %v924_v63 }
 0x15c   :  { %v743_v7 = vpop.f32.mrf.mxu3 }
 0x15d   :  { %v774_v20 = vadd.f32 %v743_v7, %v607_v18 }
 0x15e   :  { %v889_v4 = vpop.f32.mrf.mxu0 }
 0x15f   :  { %v925_v5 = vadd.f32 %v889_v4, %v771_v2  ;;  %v628_v2 = vpop.f32.mrf.mxu2 }
 0x161   :  { %941 = vst [vmem:[%s1573_s6 + $0x18] sm:$0xff] %v925_v5  ;;  %v629_v5 = vadd.f32 %v1501_v46, %v628_v2 }
 0x164   :  { %v745_v13 = vpop.f32.mrf.mxu3 }
 0x165   :  { %v775_v25 = vadd.f32 %v745_v13, %v609_v23 }
 0x166   :  { %v892_v9 = vpop.f32.mrf.mxu0 }
 0x167   :  { %v926_v10 = vadd.f32 %v892_v9, %v772_v8 }
 0x169   :  { %942 = vst [vmem:[%s1573_s6 + $0x20] sm:$0xff] %v926_v10 }
 0x16c   :  { %v748_v19 = vpop.f32.mrf.mxu3 }
 0x16d   :  { %v776_v31 = vadd.f32 %v748_v19, %v612_v29 }
 0x16e   :  { %v894_v15 = vpop.f32.mrf.mxu0 }
 0x16f   :  { %v927_v16 = vadd.f32 %v894_v15, %v773_v14 }
 0x171   :  { %943 = vst [vmem:[%s1573_s6 + $0x28] sm:$0xff] %v927_v16 }
 0x174   :  { %v750_v26 = vpop.f32.mrf.mxu3 }
 0x175   :  { %v777_v36 = vadd.f32 %v750_v26, %v614_v35 }
 0x176   :  { %v897_v21 = vpop.f32.mrf.mxu0 }
 0x177   :  { %v928_v22 = vadd.f32 %v897_v21, %v774_v20 }
 0x179   :  { %944 = vst [vmem:[%s1573_s6 + $0x30] sm:$0xff] %v928_v22 }
 0x17c   :  { %v753_v34 = vpop.f32.mrf.mxu3 }
 0x17d   :  { %v778_v42 = vadd.f32 %v753_v34, %v617_v40 }
 0x17e   :  { %v899_v27 = vpop.f32.mrf.mxu0 }
 0x17f   :  { %v929_v28 = vadd.f32 %v899_v27, %v775_v25 }
 0x181   :  { %945 = vst [vmem:[%s1573_s6 + $0x38] sm:$0xff] %v929_v28 }
 0x184   :  { %v755_v41 = vpop.f32.mrf.mxu3 }
 0x185   :  { %v779_v49 = vadd.f32 %v755_v41, %v619_v47 }
 0x186   :  { %v902_v32 = vpop.f32.mrf.mxu0 }
 0x187   :  { %v930_v33 = vadd.f32 %v902_v32, %v776_v31 }
 0x189   :  { %946 = vst [vmem:[%s1573_s6 + $0x40] sm:$0xff] %v930_v33 }
 0x18c   :  { %v758_v48 = vpop.f32.mrf.mxu3 }
 0x18d   :  { %v780_v54 = vadd.f32 %v758_v48, %v622_v52 }
 0x18e   :  { %v904_v38 = vpop.f32.mrf.mxu0 }
 0x18f   :  { %v931_v39 = vadd.f32 %v904_v38, %v777_v36 }
 0x191   :  { %947 = vst [vmem:[%s1573_s6 + $0x48] sm:$0xff] %v931_v39 }
 0x194   :  { %v760_v55 = vpop.f32.mrf.mxu3 }
 0x195   :  { %v781_v60 = vadd.f32 %v760_v55, %v624_v58 }
 0x196   :  { %v907_v43 = vpop.f32.mrf.mxu0 }
 0x197   :  { %v932_v44 = vadd.f32 %v907_v43, %v778_v42 }
 0x199   :  { %948 = vst [vmem:[%s1573_s6 + $0x50] sm:$0xff] %v932_v44 }
 0x19c   :  { %v763_v63 = vpop.f32.mrf.mxu3 }
 0x19d   :  { %v782_v1 = vadd.f32 %v763_v63, %v627_v0 }
 0x19e   :  { %v909_v50 = vpop.f32.mrf.mxu0 }
 0x19f   :  { %v933_v51 = vadd.f32 %v909_v50, %v779_v49 }
 0x1a1   :  { %949 = vst [vmem:[%s1573_s6 + $0x58] sm:$0xff] %v933_v51 }
 0x1a4   :  { %v765_v6 = vpop.f32.mrf.mxu3 }
 0x1a5   :  { %v783_v7 = vadd.f32 %v765_v6, %v629_v5 }
 0x1a6   :  { %v912_v56 = vpop.f32.mrf.mxu0 }
 0x1a7   :  { %v934_v57 = vadd.f32 %v912_v56, %v780_v54 }
 0x1a9   :  { %950 = vst [vmem:[%s1573_s6 + $0x60] sm:$0xff] %v934_v57 }
 0x1ae   :  { %v914_v61 = vpop.f32.mrf.mxu0 }
 0x1af   :  { %v935_v62 = vadd.f32 %v914_v61, %v781_v60 }
 0x1b1   :  { %951 = vst [vmem:[%s1573_s6 + $0x68] sm:$0xff] %v935_v62 }
 0x1b6   :  { %v917_v3 = vpop.f32.mrf.mxu0 }
 0x1b7   :  { %v936_v4 = vadd.f32 %v917_v3, %v782_v1 }
 0x1b9   :  { %952 = vst [vmem:[%s1573_s6 + $0x70] sm:$0xff] %v936_v4 }
 0x1be   :  { %v919_v8 = vpop.f32.mrf.mxu0 }
 0x1bf   :  { %v937_v9 = vadd.f32 %v919_v8, %v783_v7 }
 0x1c1   :  { %953 = vst [vmem:[%s1573_s6 + $0x78] sm:$0xff] %v937_v9 }

// kernel: rgcn_forward_pallas.2
= control target key start
LH: loop header
LB: loop body
LE: loop exit
PB: predicated region body
PF: predicated region fallthrough
CT: control target
= control target key end

     0   :  { %s1622_s1 = inlined_call_operand.vmem [shape: bf16[128,128], index: 1, kind: input, shape index: {}, may-alias: {1,2}]   ;;  %s1623_s0 = inlined_call_operand.vmem [shape: bf16[2,128,128], index: 0, kind: input, shape index: {}]   ;;  %s1624_s4 = inlined_call_operand.vmem [shape: bf16[128,128], index: 4, kind: input, shape index: {}]   ;;  %s1625_s3 = inlined_call_operand.vmem [shape: bf16[2,128,128], index: 3, kind: input, shape index: {}]   ;;  %s1626_s2 = inlined_call_operand.vmem [shape: bf16[128,128], index: 2, kind: input, shape index: {}, may-alias: {1,2}]   ;;  %s1627_s5 = inlined_call_operand.vmem [shape: f32[1,128], index: 5, kind: input, shape index: {}]   ;;  %s1628_s6 = inlined_call_operand.vmem [shape: bf16[128,128], index: 6, kind: output, shape index: {}]  }
   0x1   :  { %v1253_v0 = vld [vmem:[%s1622_s1 + $0x38] sm:$0xff]  ;;  %v1252_v1 = vld [vmem:[%s1622_s1 + $0x30] sm:$0xff]  ;;  %v1251_v2 = vld [vmem:[%s1622_s1 + $0x28] sm:$0xff] }
   0x2   :  { %203 = vmatpush.bf16.msra.mxu0 %v1253_v0  ;;  %1349 = vmatpush.bf16.msra.mxu1 %v1253_v0  ;;  %v1250_v3 = vld [vmem:[%s1622_s1 + $0x20] sm:$0xff]  ;;  %v1249_v4 = vld [vmem:[%s1622_s1 + $0x18] sm:$0xff]  ;;  %v1248_v5 = vld [vmem:[%s1622_s1 + $0x10] sm:$0xff] }
   0x3   :  { %1350 = vmatpush.bf16.msra.mxu2 %v1253_v0  ;;  %1351 = vmatpush.bf16.msra.mxu3 %v1253_v0  ;;  %v1247_v6 = vld [vmem:[%s1622_s1 + $0x8] sm:$0xff]  ;;  %v1246_v7 = vld [vmem:[%s1622_s1] sm:$0xff]  ;;  %v1256_v9 = vld [vmem:[%s1623_s0 + $0x10] sm:$0xff] }
   0x4   :  { %v1254_v8 = vld [vmem:[%s1623_s0] sm:$0xff]  ;;  %v1255_v10 = vld [vmem:[%s1623_s0 + $0x8] sm:$0xff]  ;;  %v1257_v11 = vld [vmem:[%s1623_s0 + $0x18] sm:$0xff] }
   0x5   :  { %v1262_v12 = vld [vmem:[%s1623_s0 + $0x40] sm:$0xff]  ;;  %v1263_v14 = vld [vmem:[%s1623_s0 + $0x48] sm:$0xff]  ;;  %v1264_v16 = vld [vmem:[%s1623_s0 + $0x50] sm:$0xff] }
   0x6   :  { %204 = vmatpush.bf16.msra.mxu0 %v1252_v1  ;;  %1352 = vmatpush.bf16.msra.mxu1 %v1252_v1  ;;  %v1258_v13 = vld [vmem:[%s1623_s0 + $0x20] sm:$0xff]  ;;  %v1259_v15 = vld [vmem:[%s1623_s0 + $0x28] sm:$0xff]  ;;  %v1260_v17 = vld [vmem:[%s1623_s0 + $0x30] sm:$0xff] }
   0x7   :  { %1353 = vmatpush.bf16.msra.mxu2 %v1252_v1  ;;  %1354 = vmatpush.bf16.msra.mxu3 %v1252_v1  ;;  %v1285_v18 = vld [vmem:[%s1624_s4 + $0x38] sm:$0xff]  ;;  %v1284_v20 = vld [vmem:[%s1624_s4 + $0x30] sm:$0xff]  ;;  %v1283_v22 = vld [vmem:[%s1624_s4 + $0x28] sm:$0xff] }
   0x8   :  { %v1293_v19 = vld [vmem:[%s1625_s3 + $0x38] sm:$0xff]  ;;  %v1292_v21 = vld [vmem:[%s1625_s3 + $0x30] sm:$0xff]  ;;  %v1291_v24 = vld [vmem:[%s1625_s3 + $0x28] sm:$0xff] }
   0x9   :  { %v1265_v23 = vld [vmem:[%s1623_s0 + $0x58] sm:$0xff]  ;;  %v1282_v26 = vld [vmem:[%s1624_s4 + $0x20] sm:$0xff]  ;;  %v1280_v30 = vld [vmem:[%s1624_s4 + $0x10] sm:$0xff] }
   0xa   :  { %205 = vmatpush.bf16.msra.mxu0 %v1251_v2  ;;  %1355 = vmatpush.bf16.msra.mxu1 %v1251_v2  ;;  %v1261_v25 = vld [vmem:[%s1623_s0 + $0x38] sm:$0xff]  ;;  %v1290_v27 = vld [vmem:[%s1625_s3 + $0x20] sm:$0xff]  ;;  %v1288_v31 = vld [vmem:[%s1625_s3 + $0x10] sm:$0xff] }
   0xb   :  { %1356 = vmatpush.bf16.msra.mxu2 %v1251_v2  ;;  %1357 = vmatpush.bf16.msra.mxu3 %v1251_v2  ;;  %v1281_v28 = vld [vmem:[%s1624_s4 + $0x18] sm:$0xff]  ;;  %v1266_v32 = vld [vmem:[%s1623_s0 + $0x60] sm:$0xff]  ;;  %v1279_v33 = vld [vmem:[%s1624_s4 + $0x8] sm:$0xff] }
   0xc   :  { %v1289_v29 = vld [vmem:[%s1625_s3 + $0x18] sm:$0xff]  ;;  %v1287_v34 = vld [vmem:[%s1625_s3 + $0x8] sm:$0xff]  ;;  %v1278_v35 = vld [vmem:[%s1624_s4] sm:$0xff] }
   0xd   :  { %v1286_v36 = vld [vmem:[%s1625_s3] sm:$0xff]  ;;  %v1301_v38 = vld [vmem:[%s1625_s3 + $0x78] sm:$0xff]  ;;  %v1300_v39 = vld [vmem:[%s1625_s3 + $0x70] sm:$0xff] }
   0xe   :  { %206 = vmatpush.bf16.msra.mxu0 %v1250_v3  ;;  %1358 = vmatpush.bf16.msra.mxu1 %v1250_v3  ;;  %v1270_v37 = vld [vmem:[%s1626_s2] sm:$0xff]  ;;  %v1267_v40 = vld [vmem:[%s1623_s0 + $0x68] sm:$0xff]  ;;  %v1297_v44 = vld [vmem:[%s1625_s3 + $0x58] sm:$0xff] }
   0xf   :  { %1359 = vmatpush.bf16.msra.mxu2 %v1250_v3  ;;  %1360 = vmatpush.bf16.msra.mxu3 %v1250_v3  ;;  %v1299_v41 = vld [vmem:[%s1625_s3 + $0x68] sm:$0xff]  ;;  %v1298_v42 = vld [vmem:[%s1625_s3 + $0x60] sm:$0xff]  ;;  %v1296_v45 = vld [vmem:[%s1625_s3 + $0x50] sm:$0xff] }
  0x10   :  { %v1271_v43 = vld [vmem:[%s1626_s2 + $0x8] sm:$0xff]  ;;  %v1268_v46 = vld [vmem:[%s1623_s0 + $0x70] sm:$0xff]  ;;  %v1294_v50 = vld [vmem:[%s1625_s3 + $0x40] sm:$0xff] }
  0x11   :  { %v1295_v49 = vld [vmem:[%s1625_s3 + $0x48] sm:$0xff]  ;;  %v1272_v51 = vld [vmem:[%s1626_s2 + $0x10] sm:$0xff]  ;;  %v1269_v55 = vld [vmem:[%s1623_s0 + $0x78] sm:$0xff] }
  0x12   :  { %207 = vmatpush.bf16.msra.mxu0 %v1249_v4  ;;  %1361 = vmatpush.bf16.msra.mxu1 %v1249_v4  ;;  %v1273_v58 = vld [vmem:[%s1626_s2 + $0x18] sm:$0xff] }
  0x13   :  { %1362 = vmatpush.bf16.msra.mxu2 %v1249_v4  ;;  %1363 = vmatpush.bf16.msra.mxu3 %v1249_v4 }
  0x16   :  { %208 = vmatpush.bf16.msra.mxu0 %v1248_v5  ;;  %1364 = vmatpush.bf16.msra.mxu1 %v1248_v5 }
  0x17   :  { %1365 = vmatpush.bf16.msra.mxu2 %v1248_v5  ;;  %1366 = vmatpush.bf16.msra.mxu3 %v1248_v5 }
  0x1a   :  { %209 = vmatpush.bf16.msra.mxu0 %v1247_v6  ;;  %1367 = vmatpush.bf16.msra.mxu1 %v1247_v6 }
  0x1b   :  { %1368 = vmatpush.bf16.msra.mxu2 %v1247_v6  ;;  %1369 = vmatpush.bf16.msra.mxu3 %v1247_v6 }
  0x1e   :  { %210 = vmatpush.bf16.msra.mxu0 %v1246_v7  ;;  %1370 = vmatpush.bf16.msra.mxu1 %v1246_v7 }
  0x1f   :  { %1371 = vmatpush.bf16.msra.mxu2 %v1246_v7  ;;  %1372 = vmatpush.bf16.msra.mxu3 %v1246_v7 }
  0x21   :  { %211 = vmatmul.bf16.vlgmr.msra.gmra.mxu0 %v1254_v8  ;;  %221 = vmatmul.bf16.vlgmr.msra.gmra.mxu1 %v1256_v9  ;;  %v1275_v8 = vld [vmem:[%s1626_s2 + $0x28] sm:$0xff] }
  0x22   :  { %366 = vmatpush.bf16.msrb.mxu1 %v1253_v0  ;;  %231 = vmatmul.bf16.vlgmr.msra.gmra.mxu2 %v1258_v13 }
  0x23   :  { %241 = vmatmul.bf16.vlgmr.msra.gmra.mxu3 %v1260_v17  ;;  %582 = vmatpush.bf16.msrb.mxu2 %v1285_v18 }
  0x24   :  { %719 = vmatpush.bf16.msrb.mxu3 %v1293_v19  ;;  %873 = vmatpush.bf16.msrb.mxu0 %v1301_v38 }
  0x26   :  { %367 = vmatpush.bf16.msrb.mxu1 %v1252_v1 }
  0x27   :  { %583 = vmatpush.bf16.msrb.mxu2 %v1284_v20 }
  0x28   :  { %720 = vmatpush.bf16.msrb.mxu3 %v1292_v21  ;;  %874 = vmatpush.bf16.msrb.mxu0 %v1300_v39 }
  0x2a   :  { %368 = vmatpush.bf16.msrb.mxu1 %v1251_v2  ;;  %v1274_v2 = vld [vmem:[%s1626_s2 + $0x20] sm:$0xff] }
  0x2b   :  { %584 = vmatpush.bf16.msrb.mxu2 %v1283_v22  ;;  %v1277_v22 = vld [vmem:[%s1626_s2 + $0x38] sm:$0xff] }
  0x2c   :  { %721 = vmatpush.bf16.msrb.mxu3 %v1291_v24  ;;  %875 = vmatpush.bf16.msrb.mxu0 %v1299_v41 }
  0x2e   :  { %369 = vmatpush.bf16.msrb.mxu1 %v1250_v3 }
  0x2f   :  { %585 = vmatpush.bf16.msrb.mxu2 %v1282_v26 }
  0x30   :  { %722 = vmatpush.bf16.msrb.mxu3 %v1290_v27  ;;  %876 = vmatpush.bf16.msrb.mxu0 %v1298_v42 }
  0x31   :  { %216 = vmatmul.bf16.gmra.mxu0 %v1255_v10  ;;  %226 = vmatmul.bf16.gmra.mxu1 %v1257_v11 }
  0x32   :  { %370 = vmatpush.bf16.msrb.mxu1 %v1249_v4  ;;  %236 = vmatmul.bf16.gmra.mxu2 %v1259_v15  ;;  %v1276_v15 = vld [vmem:[%s1626_s2 + $0x30] sm:$0xff] }
  0x33   :  { %246 = vmatmul.bf16.gmra.mxu3 %v1261_v25  ;;  %586 = vmatpush.bf16.msrb.mxu2 %v1281_v28 }
  0x34   :  { %723 = vmatpush.bf16.msrb.mxu3 %v1289_v29  ;;  %877 = vmatpush.bf16.msrb.mxu0 %v1297_v44 }
  0x36   :  { %371 = vmatpush.bf16.msrb.mxu1 %v1248_v5 }
  0x37   :  { %587 = vmatpush.bf16.msrb.mxu2 %v1280_v30 }
  0x38   :  { %724 = vmatpush.bf16.msrb.mxu3 %v1288_v31  ;;  %878 = vmatpush.bf16.msrb.mxu0 %v1296_v45 }
  0x3a   :  { %372 = vmatpush.bf16.msrb.mxu1 %v1247_v6 }
  0x3b   :  { %588 = vmatpush.bf16.msrb.mxu2 %v1279_v33 }
  0x3c   :  { %725 = vmatpush.bf16.msrb.mxu3 %v1287_v34  ;;  %879 = vmatpush.bf16.msrb.mxu0 %v1295_v49 }
  0x3e   :  { %373 = vmatpush.bf16.msrb.mxu1 %v1246_v7 }
  0x3f   :  { %589 = vmatpush.bf16.msrb.mxu2 %v1278_v35 }
  0x40   :  { %726 = vmatpush.bf16.msrb.mxu3 %v1286_v36  ;;  %880 = vmatpush.bf16.msrb.mxu0 %v1294_v50 }
  0x41   :  { %374 = vmatmul.bf16.vlgmr.msrb.gmra.mxu1 %v1262_v12 }
  0x42   :  { %590 = vmatmul.bf16.vlgmr.msrb.gmra.mxu2 %v1270_v37 }
  0x51   :  { %379 = vmatmul.bf16.gmra.mxu1 %v1263_v14 }
  0x52   :  { %595 = vmatmul.bf16.gmra.mxu2 %v1271_v43 }
  0x61   :  { %384 = vmatmul.bf16.gmra.mxu1 %v1264_v16 }
  0x62   :  { %600 = vmatmul.bf16.gmra.mxu2 %v1272_v51 }
  0x71   :  { %389 = vmatmul.bf16.gmra.mxu1 %v1265_v23 }
  0x72   :  { %605 = vmatmul.bf16.gmra.mxu2 %v1273_v58 }
  0x81   :  { %394 = vmatmul.bf16.gmra.mxu1 %v1266_v32 }
  0x82   :  { %610 = vmatmul.bf16.gmra.mxu2 %v1274_v2 }
  0x91   :  { %399 = vmatmul.bf16.gmra.mxu1 %v1267_v40 }
  0x92   :  { %615 = vmatmul.bf16.gmra.mxu2 %v1275_v8 }
  0x9e   :  { %v212_v47 = vpop.f32.mrf.mxu0  ;;  %v222_v48 = vpop.f32.mrf.mxu1 }
  0xa1   :  { %404 = vmatmul.bf16.gmra.mxu1 %v1268_v46 }
  0xa2   :  { %620 = vmatmul.bf16.gmra.mxu2 %v1276_v15 }
  0xa5   :  { %v232_v4 = vpop.f32.mrf.mxu2 }
  0xa6   :  { %v214_v52 = vpop.f32.mrf.mxu0  ;;  %v224_v53 = vpop.f32.mrf.mxu1 }
  0xa7   :  { %v647_v54 = vpack.c.bf16 %v214_v52, %v212_v47  ;;  %v649_v0 = vpack.c.bf16 %v224_v53, %v222_v48  ;;  %v242_v18 = vpop.f32.mrf.mxu3  ;;  %v1580_v47 = vld [vmem:[%s1627_s5] ss:$0 sm:$0xff] }
  0xa9   :  { %727 = vmatmul.bf16.vlgmr.msrb.gmra.mxu3 %v647_v54 }
  0xad   :  { %v234_v10 = vpop.f32.mrf.mxu2 }
  0xae   :  { %v217_v56 = vpop.f32.mrf.mxu0  ;;  %v227_v57 = vpop.f32.mrf.mxu1  ;;  %v651_v11 = vpack.c.bf16 %v234_v10, %v232_v4 }
  0xaf   :  { %v244_v24 = vpop.f32.mrf.mxu3 }
  0xb0   :  { %v653_v25 = vpack.c.bf16 %v244_v24, %v242_v18 }
  0xb1   :  { %409 = vmatmul.bf16.gmra.mxu1 %v1269_v55 }
  0xb2   :  { %625 = vmatmul.bf16.gmra.mxu2 %v1277_v22 }
  0xb5   :  { %v237_v14 = vpop.f32.mrf.mxu2 }
  0xb6   :  { %v219_v59 = vpop.f32.mrf.mxu0  ;;  %v229_v60 = vpop.f32.mrf.mxu1 }
  0xb7   :  { %v648_v61 = vpack.c.bf16 %v219_v59, %v217_v56  ;;  %v650_v6 = vpack.c.bf16 %v229_v60, %v227_v57  ;;  %v247_v28 = vpop.f32.mrf.mxu3 }
  0xb9   :  { %732 = vmatmul.bf16.gmra.mxu3 %v648_v61 }
  0xbd   :  { %v239_v17 = vpop.f32.mrf.mxu2 }
  0xbe   :  { %v375_v62 = vpop.f32.mrf.mxu1  ;;  %v652_v19 = vpack.c.bf16 %v239_v17, %v237_v14 }
  0xbf   :  { %v249_v30 = vpop.f32.mrf.mxu3 }
  0xc0   :  { %v654_v31 = vpack.c.bf16 %v249_v30, %v247_v28 }
  0xc5   :  { %v591_v35 = vpop.f32.mrf.mxu2 }
  0xc6   :  { %v377_v63 = vpop.f32.mrf.mxu1  ;;  %v592_v50 = vadd.f32 %v1580_v47, %v591_v35 }
  0xc7   :  { %v800_v1 = vpack.c.bf16 %v377_v63, %v375_v62 }
  0xc9   :  { %737 = vmatmul.bf16.gmra.mxu3 %v649_v0  ;;  %881 = vmatmul.bf16.vlgmr.msrb.gmra.mxu0 %v800_v1 }
  0xcd   :  { %v593_v39 = vpop.f32.mrf.mxu2 }
  0xce   :  { %v380_v3 = vpop.f32.mrf.mxu1  ;;  %v594_v51 = vadd.f32 %v1580_v47, %v593_v39 }
  0xd5   :  { %v596_v43 = vpop.f32.mrf.mxu2 }
  0xd6   :  { %v382_v5 = vpop.f32.mrf.mxu1  ;;  %v597_v0 = vadd.f32 %v1580_v47, %v596_v43 }
  0xd7   :  { %v801_v7 = vpack.c.bf16 %v382_v5, %v380_v3 }
  0xd9   :  { %742 = vmatmul.bf16.gmra.mxu3 %v650_v6  ;;  %886 = vmatmul.bf16.gmra.mxu0 %v801_v7 }
  0xdd   :  { %v598_v46 = vpop.f32.mrf.mxu2 }
  0xde   :  { %v385_v9 = vpop.f32.mrf.mxu1  ;;  %v599_v2 = vadd.f32 %v1580_v47, %v598_v46 }
  0xe5   :  { %v601_v52 = vpop.f32.mrf.mxu2 }
  0xe6   :  { %v387_v12 = vpop.f32.mrf.mxu1  ;;  %v602_v14 = vadd.f32 %v1580_v47, %v601_v52 }
  0xe7   :  { %v802_v13 = vpack.c.bf16 %v387_v12, %v385_v9 }
  0xe9   :  { %891 = vmatmul.bf16.gmra.mxu0 %v802_v13  ;;  %747 = vmatmul.bf16.gmra.mxu3 %v651_v11 }
  0xed   :  { %v603_v62 = vpop.f32.mrf.mxu2 }
  0xee   :  { %v390_v16 = vpop.f32.mrf.mxu1 }
  0xf5   :  { %v606_v6 = vpop.f32.mrf.mxu2 }
  0xf6   :  { %v392_v20 = vpop.f32.mrf.mxu1 }
  0xf7   :  { %v803_v21 = vpack.c.bf16 %v392_v20, %v390_v16  ;;  %v604_v16 = vadd.f32 %v1580_v47, %v603_v62 }
  0xf9   :  { %896 = vmatmul.bf16.gmra.mxu0 %v803_v21  ;;  %752 = vmatmul.bf16.gmra.mxu3 %v652_v19 }
  0xfd   :  { %v608_v15 = vpop.f32.mrf.mxu2 }
  0xfe   :  { %v395_v23 = vpop.f32.mrf.mxu1  ;;  %v609_v30 = vadd.f32 %v1580_v47, %v608_v15 }
 0x106   :  { %v397_v26 = vpop.f32.mrf.mxu1 }
 0x107   :  { %v804_v27 = vpack.c.bf16 %v397_v26, %v395_v23  ;;  %v611_v23 = vpop.f32.mrf.mxu2 }
 0x108   :  { %v612_v43 = vadd.f32 %v1580_v47, %v611_v23 }
 0x109   :  { %901 = vmatmul.bf16.gmra.mxu0 %v804_v27  ;;  %757 = vmatmul.bf16.gmra.mxu3 %v653_v25 }
 0x10e   :  { %v400_v29 = vpop.f32.mrf.mxu1 }
 0x116   :  { %v402_v32 = vpop.f32.mrf.mxu1 }
 0x117   :  { %v805_v33 = vpack.c.bf16 %v402_v32, %v400_v29  ;;  %v607_v29 = vadd.f32 %v1580_v47, %v606_v6 }
 0x119   :  { %906 = vmatmul.bf16.gmra.mxu0 %v805_v33  ;;  %762 = vmatmul.bf16.gmra.mxu3 %v654_v31  ;;  %v613_v31 = vpop.f32.mrf.mxu2 }
 0x11e   :  { %v405_v34 = vpop.f32.mrf.mxu1 }
 0x126   :  { %v407_v36 = vpop.f32.mrf.mxu1 }
 0x127   :  { %v806_v37 = vpack.c.bf16 %v407_v36, %v405_v34 }
 0x129   :  { %911 = vmatmul.bf16.gmra.mxu0 %v806_v37 }
 0x12c   :  { %v728_v38 = vpop.f32.mrf.mxu3 }
 0x12d   :  { %v768_v53 = vadd.f32 %v728_v38, %v592_v50 }
 0x12e   :  { %v410_v40 = vpop.f32.mrf.mxu1 }
 0x134   :  { %v730_v41 = vpop.f32.mrf.mxu3 }
 0x135   :  { %v769_v54 = vadd.f32 %v730_v41, %v594_v51  ;;  %v616_v41 = vpop.f32.mrf.mxu2 }
 0x136   :  { %v412_v42 = vpop.f32.mrf.mxu1 }
 0x137   :  { %v807_v44 = vpack.c.bf16 %v412_v42, %v410_v40 }
 0x139   :  { %916 = vmatmul.bf16.gmra.mxu0 %v807_v44 }
 0x13c   :  { %v733_v45 = vpop.f32.mrf.mxu3 }
 0x13d   :  { %v770_v3 = vadd.f32 %v733_v45, %v597_v0  ;;  %v614_v45 = vadd.f32 %v1580_v47, %v613_v31  ;;  %v618_v50 = vpop.f32.mrf.mxu2 }
 0x144   :  { %v735_v48 = vpop.f32.mrf.mxu3 }
 0x145   :  { %v771_v4 = vadd.f32 %v735_v48, %v599_v2 }
 0x146   :  { %v882_v49 = vpop.f32.mrf.mxu0 }
 0x147   :  { %v922_v55 = vadd.f32 %v882_v49, %v768_v53 }
 0x149   :  { %v938_v59 = vmax.f32 %v922_v55, 0.0 }
 0x14c   :  { %v738_v56 = vpop.f32.mrf.mxu3 }
 0x14d   :  { %v772_v17 = vadd.f32 %v738_v56, %v602_v14 }
 0x14e   :  { %v884_v57 = vpop.f32.mrf.mxu0 }
 0x14f   :  { %v923_v58 = vadd.f32 %v884_v57, %v769_v54 }
 0x151   :  { %v939_v60 = vmax.f32 %v923_v58, 0.0  ;;  %v617_v58 = vadd.f32 %v1580_v47, %v616_v41 }
 0x153   :  { %v1305_v61 = vpack.c.bf16 %v939_v60, %v938_v59  ;;  %v621_v59 = vpop.f32.mrf.mxu2  ;;  %v619_v60 = vadd.f32 %v1580_v47, %v618_v50 }
 0x154   :  { %v740_v1 = vpop.f32.mrf.mxu3 }
 0x155   :  { %1306 = vst [vmem:[%s1628_s6] sm:$0xff] %v1305_v61   ;;  %v773_v19 = vadd.f32 %v740_v1, %v604_v16 }
 0x156   :  { %v887_v63 = vpop.f32.mrf.mxu0 }
 0x157   :  { %v924_v5 = vadd.f32 %v887_v63, %v770_v3 }
 0x159   :  { %v940_v9 = vmax.f32 %v924_v5, 0.0 }
 0x15b   :  { %v623_v5 = vpop.f32.mrf.mxu2 }
 0x15c   :  { %v743_v11 = vpop.f32.mrf.mxu3 }
 0x15d   :  { %v774_v32 = vadd.f32 %v743_v11, %v607_v29 }
 0x15e   :  { %v889_v7 = vpop.f32.mrf.mxu0 }
 0x15f   :  { %v925_v8 = vadd.f32 %v889_v7, %v771_v4 }
 0x161   :  { %v941_v10 = vmax.f32 %v925_v8, 0.0 }
 0x163   :  { %v1310_v12 = vpack.c.bf16 %v941_v10, %v940_v9  ;;  %v622_v9 = vadd.f32 %v1580_v47, %v621_v59  ;;  %v624_v10 = vadd.f32 %v1580_v47, %v623_v5 }
 0x164   :  { %v745_v18 = vpop.f32.mrf.mxu3 }
 0x165   :  { %1342 = vst [vmem:[%s1628_s6 + $0x8] sm:$0xff] %v1310_v12   ;;  %v775_v33 = vadd.f32 %v745_v18, %v609_v30  ;;  %v626_v12 = vpop.f32.mrf.mxu2 }
 0x166   :  { %v892_v13 = vpop.f32.mrf.mxu0  ;;  %v627_v23 = vadd.f32 %v1580_v47, %v626_v12 }
 0x167   :  { %v926_v20 = vadd.f32 %v892_v13, %v772_v17 }
 0x169   :  { %v942_v24 = vmax.f32 %v926_v20, 0.0 }
 0x16c   :  { %v748_v27 = vpop.f32.mrf.mxu3 }
 0x16d   :  { %v776_v46 = vadd.f32 %v748_v27, %v612_v43 }
 0x16e   :  { %v894_v21 = vpop.f32.mrf.mxu0 }
 0x16f   :  { %v927_v22 = vadd.f32 %v894_v21, %v773_v19  ;;  %v628_v21 = vpop.f32.mrf.mxu2 }
 0x171   :  { %v943_v25 = vmax.f32 %v927_v22, 0.0 }
 0x173   :  { %v1315_v26 = vpack.c.bf16 %v943_v25, %v942_v24  ;;  %v629_v24 = vadd.f32 %v1580_v47, %v628_v21 }
 0x174   :  { %v750_v35 = vpop.f32.mrf.mxu3 }
 0x175   :  { %1343 = vst [vmem:[%s1628_s6 + $0x10] sm:$0xff] %v1315_v26   ;;  %v777_v48 = vadd.f32 %v750_v35, %v614_v45 }
 0x176   :  { %v897_v28 = vpop.f32.mrf.mxu0 }
 0x177   :  { %v928_v34 = vadd.f32 %v897_v28, %v774_v32 }
 0x179   :  { %v944_v38 = vmax.f32 %v928_v34, 0.0 }
 0x17c   :  { %v753_v44 = vpop.f32.mrf.mxu3 }
 0x17d   :  { %v778_v61 = vadd.f32 %v753_v44, %v617_v58 }
 0x17e   :  { %v899_v36 = vpop.f32.mrf.mxu0 }
 0x17f   :  { %v929_v37 = vadd.f32 %v899_v36, %v775_v33 }
 0x181   :  { %v945_v39 = vmax.f32 %v929_v37, 0.0 }
 0x183   :  { %v1320_v40 = vpack.c.bf16 %v945_v39, %v944_v38 }
 0x184   :  { %v755_v55 = vpop.f32.mrf.mxu3 }
 0x185   :  { %1344 = vst [vmem:[%s1628_s6 + $0x18] sm:$0xff] %v1320_v40   ;;  %v779_v63 = vadd.f32 %v755_v55, %v619_v60 }
 0x186   :  { %v902_v42 = vpop.f32.mrf.mxu0 }
 0x187   :  { %v930_v49 = vadd.f32 %v902_v42, %v776_v46 }
 0x189   :  { %v946_v53 = vmax.f32 %v930_v49, 0.0 }
 0x18c   :  { %v758_v62 = vpop.f32.mrf.mxu3 }
 0x18d   :  { %v780_v11 = vadd.f32 %v758_v62, %v622_v9 }
 0x18e   :  { %v904_v51 = vpop.f32.mrf.mxu0 }
 0x18f   :  { %v931_v52 = vadd.f32 %v904_v51, %v777_v48 }
 0x191   :  { %v947_v54 = vmax.f32 %v931_v52, 0.0 }
 0x193   :  { %v1325_v56 = vpack.c.bf16 %v947_v54, %v946_v53 }
 0x194   :  { %v760_v7 = vpop.f32.mrf.mxu3 }
 0x195   :  { %1345 = vst [vmem:[%s1628_s6 + $0x20] sm:$0xff] %v1325_v56   ;;  %v781_v13 = vadd.f32 %v760_v7, %v624_v10 }
 0x196   :  { %v907_v57 = vpop.f32.mrf.mxu0 }
 0x197   :  { %v932_v0 = vadd.f32 %v907_v57, %v778_v61 }
 0x199   :  { %v948_v3 = vmax.f32 %v932_v0, 0.0 }
 0x19c   :  { %v763_v17 = vpop.f32.mrf.mxu3 }
 0x19d   :  { %v782_v26 = vadd.f32 %v763_v17, %v627_v23 }
 0x19e   :  { %v909_v1 = vpop.f32.mrf.mxu0 }
 0x19f   :  { %v933_v2 = vadd.f32 %v909_v1, %v779_v63 }
 0x1a1   :  { %v949_v4 = vmax.f32 %v933_v2, 0.0 }
 0x1a3   :  { %v1330_v6 = vpack.c.bf16 %v949_v4, %v948_v3 }
 0x1a4   :  { %v765_v25 = vpop.f32.mrf.mxu3 }
 0x1a5   :  { %1346 = vst [vmem:[%s1628_s6 + $0x28] sm:$0xff] %v1330_v6   ;;  %v783_v27 = vadd.f32 %v765_v25, %v629_v24 }
 0x1a6   :  { %v912_v8 = vpop.f32.mrf.mxu0 }
 0x1a7   :  { %v934_v14 = vadd.f32 %v912_v8, %v780_v11 }
 0x1a9   :  { %v950_v18 = vmax.f32 %v934_v14, 0.0 }
 0x1ae   :  { %v914_v15 = vpop.f32.mrf.mxu0 }
 0x1af   :  { %v935_v16 = vadd.f32 %v914_v15, %v781_v13 }
 0x1b1   :  { %v951_v19 = vmax.f32 %v935_v16, 0.0 }
 0x1b3   :  { %v1335_v20 = vpack.c.bf16 %v951_v19, %v950_v18 }
 0x1b5   :  { %1347 = vst [vmem:[%s1628_s6 + $0x30] sm:$0xff] %v1335_v20  }
 0x1b6   :  { %v917_v22 = vpop.f32.mrf.mxu0 }
 0x1b7   :  { %v936_v28 = vadd.f32 %v917_v22, %v782_v26 }
 0x1b9   :  { %v952_v31 = vmax.f32 %v936_v28, 0.0 }
 0x1be   :  { %v919_v29 = vpop.f32.mrf.mxu0 }
 0x1bf   :  { %v937_v30 = vadd.f32 %v919_v29, %v783_v27 }
 0x1c1   :  { %v953_v32 = vmax.f32 %v937_v30, 0.0 }
 0x1c3   :  { %v1340_v33 = vpack.c.bf16 %v953_v32, %v952_v31 }
 0x1c5   :  { %1348 = vst [vmem:[%s1628_s6 + $0x38] sm:$0xff] %v1340_v33  }

</bundles_post_ra>
